<compile_context>
chip_gen: v6e
topology: v6e:2x2x1
jax: 0.10.0
libtpu: 0.0.40
codegen_flags: <defaults>
</compile_context>

<pallas_src>
import functools

import numpy as np
import jax
import jax.numpy as jnp
from jax import lax
from jax.experimental import pallas as pl
from jax.experimental.pallas import tpu as pltpu


def lstm_classifier_kernel(x_ref, w_ih_ref, w_hh_ref, b_ref,
                           w_out_ref, b_out_ref, out_ref,
                           *, seq_len, batch_p, hidden):
    """x_ref: (S*BP, E) embedded inputs, time-major, batch padded to BP (mult of 8).

    NOTE: gate slices z[:, k*H:(k+1)*H] are lane-aligned because H (=128) is a
    multiple of 128. If H ever changes, restructure z as (4, BP, H) or pad H.
    """
    H = hidden
    BP = batch_p

    # --- Hoisted input projection: one (S*BP, E) @ (E, 4H) matmul + one bias add.
    z_x = (jnp.dot(x_ref[...], w_ih_ref[...],
                   preferred_element_type=jnp.float32)
           + b_ref[...])                                   # (S*BP, 4H)

    w_hh = w_hh_ref[...]                                   # (H, 4H), loaded once

    # --- Recurrence, fully unrolled (S is small & static); h/c stay in registers.
    h = jnp.zeros((BP, H), jnp.float32)
    c = jnp.zeros((BP, H), jnp.float32)
    for t in range(seq_len):
        # Static, sublane-aligned slice (BP is a multiple of 8) -> no VMEM copy.
        z = (z_x[t * BP:(t + 1) * BP, :]
             + jnp.dot(h, w_hh, preferred_element_type=jnp.float32))  # (BP, 4H)
        i_g = jax.nn.sigmoid(z[:, 0 * H:1 * H])
        f_g = jax.nn.sigmoid(z[:, 1 * H:2 * H])
        g_g = jnp.tanh(z[:, 2 * H:3 * H])
        o_g = jax.nn.sigmoid(z[:, 3 * H:4 * H])
        c = f_g * c + i_g * g_g
        h = o_g * jnp.tanh(c)

    # --- Final projection of the LAST timestep's hidden state.
    # O=16 < 128 lanes => masked store; runs exactly once, so acceptable.
    out_ref[...] = (jnp.dot(h, w_out_ref[...],
                            preferred_element_type=jnp.float32)
                    + b_out_ref[...])


def intent_classifier_forward(token_ids, params):
    """token_ids: (seq_len, batch) int32. Returns (batch, output_count) f32."""
    emb_table = params["emb"]
    # Embedding lookup = glue (gather), done in plain JAX.
    # TODO(synk): could be fused via scalar-prefetched ids + pl.Element index_map.
    emb = jnp.take(emb_table, token_ids, axis=0)           # (S, B, E)
    S, B, E = emb.shape
    H = params["w_hh"].shape[0]
    O = params["w_out"].shape[1]

    # Pad batch to the f32 sublane granularity (8) so vregs / MXU rows are dense.
    BP = max(8, ((B + 7) // 8) * 8)
    if BP != B:
        emb = jnp.pad(emb, ((0, 0), (0, BP - B), (0, 0)))
    x2d = emb.reshape(S * BP, E)                           # one contiguous VMEM block

    kernel = functools.partial(lstm_classifier_kernel,
                               seq_len=S, batch_p=BP, hidden=H)

    out_padded = pl.pallas_call(
        kernel,
        out_shape=jax.ShapeDtypeStruct((BP, O), jnp.float32),
        grid_spec=pltpu.PrefetchScalarGridSpec(
            num_scalar_prefetch=0,
            grid=(1,),                                     # whole recurrence in-kernel
            in_specs=[
                pl.BlockSpec((S * BP, E), lambda i: (0, 0)),   # embedded inputs
                pl.BlockSpec((E, 4 * H), lambda i: (0, 0)),    # W_ih^T
                pl.BlockSpec((H, 4 * H), lambda i: (0, 0)),    # W_hh^T
                pl.BlockSpec((1, 4 * H), lambda i: (0, 0)),    # b_ih + b_hh
                pl.BlockSpec((H, O), lambda i: (0, 0)),        # W_out^T
                pl.BlockSpec((1, O), lambda i: (0, 0)),        # b_out
            ],
            out_specs=pl.BlockSpec((BP, O), lambda i: (0, 0)),
        ),
        compiler_params=pltpu.CompilerParams(
            dimension_semantics=("arbitrary",)),
    )(x2d, params["w_ih"], params["w_hh"], params["b"],
      params["w_out"], params["b_out"])

    return out_padded[:B]                                  # drop padded batch rows


def reference_forward(token_ids, params):
    """Pure-JAX reference (matches PyTorch LSTM semantics)."""
    emb = jnp.take(params["emb"], token_ids, axis=0)       # (S, B, E)
    H = params["w_hh"].shape[0]

    def step(carry, x_t):
        h, c = carry
        z = x_t @ params["w_ih"] + h @ params["w_hh"] + params["b"]
        i = jax.nn.sigmoid(z[:, 0 * H:1 * H])
        f = jax.nn.sigmoid(z[:, 1 * H:2 * H])
        g = jnp.tanh(z[:, 2 * H:3 * H])
        o = jax.nn.sigmoid(z[:, 3 * H:4 * H])
        c = f * c + i * g
        h = o * jnp.tanh(c)
        return (h, c), h

    B = emb.shape[1]
    h0 = jnp.zeros((B, H), jnp.float32)
    (h, _), _ = lax.scan(step, (h0, h0), emb)
    return h @ params["w_out"] + params["b_out"]


def make_params(key, vocab_size, output_count, emb_dim, hidden_dim):
    ks = jax.random.split(key, 7)
    s = 0.1
    return {
        "emb":   jax.random.normal(ks[0], (vocab_size, emb_dim), jnp.float32) * s,
        # stored transposed relative to PyTorch: (E, 4H), (H, 4H)
        "w_ih":  jax.random.normal(ks[1], (emb_dim, 4 * hidden_dim), jnp.float32) * s,
        "w_hh":  jax.random.normal(ks[2], (hidden_dim, 4 * hidden_dim), jnp.float32) * s,
        # combined b_ih + b_hh, kept 2D for TPU layout
        "b":     jax.random.normal(ks[3], (1, 4 * hidden_dim), jnp.float32) * s,
        "w_out": jax.random.normal(ks[4], (hidden_dim, output_count), jnp.float32) * s,
        "b_out": jax.random.normal(ks[5], (1, output_count), jnp.float32) * s,
    }


if __name__ == "__main__":
    vocab_size = 50
    output_count = 16
    emb_dim = 64
    lstm_hidden_dim = 128
    seq_len = 8
    batch = 2

    key = jax.random.PRNGKey(0)
    k_tok, k_par = jax.random.split(key)
    params = make_params(k_par, vocab_size, output_count, emb_dim, lstm_hidden_dim)
    token_ids = jax.random.randint(k_tok, (seq_len, batch), 0, vocab_size, jnp.int32)

    logits = intent_classifier_forward(token_ids, params)
    logits = jax.block_until_ready(logits)

    ref = jax.block_until_ready(reference_forward(token_ids, params))
    assert logits.shape == (batch, output_count)
    np.testing.assert_allclose(np.asarray(logits), np.asarray(ref),
                               rtol=1e-5, atol=1e-5)
    print("KERNEL_OK")
</pallas_src>

<mosaic_0001>
module attributes {stable_mosaic.version = 11 : i64} {
  func.func @lstm_classifier_kernel(%arg0: i32, %arg1: memref<64x64xf32, #tpu.memory_space<vmem>>, %arg2: memref<64x512xf32, #tpu.memory_space<vmem>>, %arg3: memref<128x512xf32, #tpu.memory_space<vmem>>, %arg4: memref<1x512xf32, #tpu.memory_space<vmem>>, %arg5: memref<128x16xf32, #tpu.memory_space<vmem>>, %arg6: memref<1x16xf32, #tpu.memory_space<vmem>>, %arg7: memref<8x16xf32, #tpu.memory_space<vmem>>) attributes {dimension_semantics = [#tpu.dimension_semantics<arbitrary>], iteration_bounds = array<i64: 1>, scalar_prefetch = 0 : i64, scratch_operands = 0 : i64, tpu.core_type = #tpu.core_type<tc>, window_params = [{pipeline_mode = #tpu.pipeline_mode<synchronous>, transform_indices = @transform_0, window_bounds = array<i64: 64, 64>}, {pipeline_mode = #tpu.pipeline_mode<synchronous>, transform_indices = @transform_1, window_bounds = array<i64: 64, 512>}, {pipeline_mode = #tpu.pipeline_mode<synchronous>, transform_indices = @transform_2, window_bounds = array<i64: 128, 512>}, {pipeline_mode = #tpu.pipeline_mode<synchronous>, transform_indices = @transform_3, window_bounds = array<i64: 1, 512>}, {pipeline_mode = #tpu.pipeline_mode<synchronous>, transform_indices = @transform_4, window_bounds = array<i64: 128, 16>}, {pipeline_mode = #tpu.pipeline_mode<synchronous>, transform_indices = @transform_5, window_bounds = array<i64: 1, 16>}, {pipeline_mode = #tpu.pipeline_mode<synchronous>, transform_indices = @transform_6, window_bounds = array<i64: 8, 16>}]} {
    %c0 = arith.constant 0 : index
    %c0_0 = arith.constant 0 : index
    %0 = vector.load %arg1[%c0, %c0_0] : memref<64x64xf32, #tpu.memory_space<vmem>>, vector<64x64xf32>
    %c0_1 = arith.constant 0 : index
    %c0_2 = arith.constant 0 : index
    %1 = vector.load %arg2[%c0_1, %c0_2] : memref<64x512xf32, #tpu.memory_space<vmem>>, vector<64x512xf32>
    %cst = arith.constant dense<0.000000e+00> : vector<64x512xf32>
    %2 = tpu.matmul %0, %1, %cst {dimension_numbers = #tpu.dot_dimension_numbers<[1], [0], [0], [1], [0, 0, 1, 1], [], []>} : vector<64x64xf32>, vector<64x512xf32>, vector<64x512xf32> -> vector<64x512xf32>
    %c0_3 = arith.constant 0 : index
    %c0_4 = arith.constant 0 : index
    %3 = vector.load %arg4[%c0_3, %c0_4] : memref<1x512xf32, #tpu.memory_space<vmem>>, vector<1x512xf32>
    %4 = vector.broadcast %3 : vector<1x512xf32> to vector<64x512xf32>
    %5 = arith.addf %2, %4 : vector<64x512xf32>
    %c0_5 = arith.constant 0 : index
    %c0_6 = arith.constant 0 : index
    %6 = vector.load %arg3[%c0_5, %c0_6] : memref<128x512xf32, #tpu.memory_space<vmem>>, vector<128x512xf32>
    %cst_7 = arith.constant 0.000000e+00 : f32
    %7 = vector.broadcast %cst_7 : f32 to vector<8x128xf32>
    %cst_8 = arith.constant 0.000000e+00 : f32
    %8 = vector.broadcast %cst_8 : f32 to vector<8x128xf32>
    %9 = vector.extract_strided_slice %5 {offsets = [0, 0], sizes = [8, 512], strides = [1, 1]} : vector<64x512xf32> to vector<8x512xf32>
    %cst_9 = arith.constant dense<0.000000e+00> : vector<8x512xf32>
    %10 = tpu.matmul %7, %6, %cst_9 {dimension_numbers = #tpu.dot_dimension_numbers<[1], [0], [0], [1], [0, 0, 1, 1], [], []>} : vector<8x128xf32>, vector<128x512xf32>, vector<8x512xf32> -> vector<8x512xf32>
    %11 = arith.addf %9, %10 : vector<8x512xf32>
    %12 = vector.extract_strided_slice %11 {offsets = [0, 0], sizes = [8, 128], strides = [1, 1]} : vector<8x512xf32> to vector<8x128xf32>
    %13 = arith.negf %12 : vector<8x128xf32>
    %14 = math.exp %13 : vector<8x128xf32>
    %cst_10 = arith.constant 1.000000e+00 : f32
    %15 = vector.broadcast %cst_10 : f32 to vector<8x128xf32>
    %16 = arith.addf %15, %14 : vector<8x128xf32>
    %17 = arith.divf %15, %16 : vector<8x128xf32>
    %18 = vector.extract_strided_slice %11 {offsets = [0, 128], sizes = [8, 128], strides = [1, 1]} : vector<8x512xf32> to vector<8x128xf32>
    %19 = arith.negf %18 : vector<8x128xf32>
    %20 = math.exp %19 : vector<8x128xf32>
    %cst_11 = arith.constant 1.000000e+00 : f32
    %21 = vector.broadcast %cst_11 : f32 to vector<8x128xf32>
    %22 = arith.addf %21, %20 : vector<8x128xf32>
    %23 = arith.divf %21, %22 : vector<8x128xf32>
    %24 = vector.extract_strided_slice %11 {offsets = [0, 256], sizes = [8, 128], strides = [1, 1]} : vector<8x512xf32> to vector<8x128xf32>
    %25 = math.tanh %24 : vector<8x128xf32>
    %26 = vector.extract_strided_slice %11 {offsets = [0, 384], sizes = [8, 128], strides = [1, 1]} : vector<8x512xf32> to vector<8x128xf32>
    %27 = arith.negf %26 : vector<8x128xf32>
    %28 = math.exp %27 : vector<8x128xf32>
    %cst_12 = arith.constant 1.000000e+00 : f32
    %29 = vector.broadcast %cst_12 : f32 to vector<8x128xf32>
    %30 = arith.addf %29, %28 : vector<8x128xf32>
    %31 = arith.divf %29, %30 : vector<8x128xf32>
    %32 = arith.mulf %23, %8 : vector<8x128xf32>
    %33 = arith.mulf %17, %25 : vector<8x128xf32>
    %34 = arith.addf %32, %33 : vector<8x128xf32>
    %35 = math.tanh %34 : vector<8x128xf32>
    %36 = arith.mulf %31, %35 : vector<8x128xf32>
    %37 = vector.extract_strided_slice %5 {offsets = [8, 0], sizes = [8, 512], strides = [1, 1]} : vector<64x512xf32> to vector<8x512xf32>
    %cst_13 = arith.constant dense<0.000000e+00> : vector<8x512xf32>
    %38 = tpu.matmul %36, %6, %cst_13 {dimension_numbers = #tpu.dot_dimension_numbers<[1], [0], [0], [1], [0, 0, 1, 1], [], []>} : vector<8x128xf32>, vector<128x512xf32>, vector<8x512xf32> -> vector<8x512xf32>
    %39 = arith.addf %37, %38 : vector<8x512xf32>
    %40 = vector.extract_strided_slice %39 {offsets = [0, 0], sizes = [8, 128], strides = [1, 1]} : vector<8x512xf32> to vector<8x128xf32>
    %41 = arith.negf %40 : vector<8x128xf32>
    %42 = math.exp %41 : vector<8x128xf32>
    %cst_14 = arith.constant 1.000000e+00 : f32
    %43 = vector.broadcast %cst_14 : f32 to vector<8x128xf32>
    %44 = arith.addf %43, %42 : vector<8x128xf32>
    %45 = arith.divf %43, %44 : vector<8x128xf32>
    %46 = vector.extract_strided_slice %39 {offsets = [0, 128], sizes = [8, 128], strides = [1, 1]} : vector<8x512xf32> to vector<8x128xf32>
    %47 = arith.negf %46 : vector<8x128xf32>
    %48 = math.exp %47 : vector<8x128xf32>
    %cst_15 = arith.constant 1.000000e+00 : f32
    %49 = vector.broadcast %cst_15 : f32 to vector<8x128xf32>
    %50 = arith.addf %49, %48 : vector<8x128xf32>
    %51 = arith.divf %49, %50 : vector<8x128xf32>
    %52 = vector.extract_strided_slice %39 {offsets = [0, 256], sizes = [8, 128], strides = [1, 1]} : vector<8x512xf32> to vector<8x128xf32>
    %53 = math.tanh %52 : vector<8x128xf32>
    %54 = vector.extract_strided_slice %39 {offsets = [0, 384], sizes = [8, 128], strides = [1, 1]} : vector<8x512xf32> to vector<8x128xf32>
    %55 = arith.negf %54 : vector<8x128xf32>
    %56 = math.exp %55 : vector<8x128xf32>
    %cst_16 = arith.constant 1.000000e+00 : f32
    %57 = vector.broadcast %cst_16 : f32 to vector<8x128xf32>
    %58 = arith.addf %57, %56 : vector<8x128xf32>
    %59 = arith.divf %57, %58 : vector<8x128xf32>
    %60 = arith.mulf %51, %34 : vector<8x128xf32>
    %61 = arith.mulf %45, %53 : vector<8x128xf32>
    %62 = arith.addf %60, %61 : vector<8x128xf32>
    %63 = math.tanh %62 : vector<8x128xf32>
    %64 = arith.mulf %59, %63 : vector<8x128xf32>
    %65 = vector.extract_strided_slice %5 {offsets = [16, 0], sizes = [8, 512], strides = [1, 1]} : vector<64x512xf32> to vector<8x512xf32>
    %cst_17 = arith.constant dense<0.000000e+00> : vector<8x512xf32>
    %66 = tpu.matmul %64, %6, %cst_17 {dimension_numbers = #tpu.dot_dimension_numbers<[1], [0], [0], [1], [0, 0, 1, 1], [], []>} : vector<8x128xf32>, vector<128x512xf32>, vector<8x512xf32> -> vector<8x512xf32>
    %67 = arith.addf %65, %66 : vector<8x512xf32>
    %68 = vector.extract_strided_slice %67 {offsets = [0, 0], sizes = [8, 128], strides = [1, 1]} : vector<8x512xf32> to vector<8x128xf32>
    %69 = arith.negf %68 : vector<8x128xf32>
    %70 = math.exp %69 : vector<8x128xf32>
    %cst_18 = arith.constant 1.000000e+00 : f32
    %71 = vector.broadcast %cst_18 : f32 to vector<8x128xf32>
    %72 = arith.addf %71, %70 : vector<8x128xf32>
    %73 = arith.divf %71, %72 : vector<8x128xf32>
    %74 = vector.extract_strided_slice %67 {offsets = [0, 128], sizes = [8, 128], strides = [1, 1]} : vector<8x512xf32> to vector<8x128xf32>
    %75 = arith.negf %74 : vector<8x128xf32>
    %76 = math.exp %75 : vector<8x128xf32>
    %cst_19 = arith.constant 1.000000e+00 : f32
    %77 = vector.broadcast %cst_19 : f32 to vector<8x128xf32>
    %78 = arith.addf %77, %76 : vector<8x128xf32>
    %79 = arith.divf %77, %78 : vector<8x128xf32>
    %80 = vector.extract_strided_slice %67 {offsets = [0, 256], sizes = [8, 128], strides = [1, 1]} : vector<8x512xf32> to vector<8x128xf32>
    %81 = math.tanh %80 : vector<8x128xf32>
    %82 = vector.extract_strided_slice %67 {offsets = [0, 384], sizes = [8, 128], strides = [1, 1]} : vector<8x512xf32> to vector<8x128xf32>
    %83 = arith.negf %82 : vector<8x128xf32>
    %84 = math.exp %83 : vector<8x128xf32>
    %cst_20 = arith.constant 1.000000e+00 : f32
    %85 = vector.broadcast %cst_20 : f32 to vector<8x128xf32>
    %86 = arith.addf %85, %84 : vector<8x128xf32>
    %87 = arith.divf %85, %86 : vector<8x128xf32>
    %88 = arith.mulf %79, %62 : vector<8x128xf32>
    %89 = arith.mulf %73, %81 : vector<8x128xf32>
    %90 = arith.addf %88, %89 : vector<8x128xf32>
    %91 = math.tanh %90 : vector<8x128xf32>
    %92 = arith.mulf %87, %91 : vector<8x128xf32>
    %93 = vector.extract_strided_slice %5 {offsets = [24, 0], sizes = [8, 512], strides = [1, 1]} : vector<64x512xf32> to vector<8x512xf32>
    %cst_21 = arith.constant dense<0.000000e+00> : vector<8x512xf32>
    %94 = tpu.matmul %92, %6, %cst_21 {dimension_numbers = #tpu.dot_dimension_numbers<[1], [0], [0], [1], [0, 0, 1, 1], [], []>} : vector<8x128xf32>, vector<128x512xf32>, vector<8x512xf32> -> vector<8x512xf32>
    %95 = arith.addf %93, %94 : vector<8x512xf32>
    %96 = vector.extract_strided_slice %95 {offsets = [0, 0], sizes = [8, 128], strides = [1, 1]} : vector<8x512xf32> to vector<8x128xf32>
    %97 = arith.negf %96 : vector<8x128xf32>
    %98 = math.exp %97 : vector<8x128xf32>
    %cst_22 = arith.constant 1.000000e+00 : f32
    %99 = vector.broadcast %cst_22 : f32 to vector<8x128xf32>
    %100 = arith.addf %99, %98 : vector<8x128xf32>
    %101 = arith.divf %99, %100 : vector<8x128xf32>
    %102 = vector.extract_strided_slice %95 {offsets = [0, 128], sizes = [8, 128], strides = [1, 1]} : vector<8x512xf32> to vector<8x128xf32>
    %103 = arith.negf %102 : vector<8x128xf32>
    %104 = math.exp %103 : vector<8x128xf32>
    %cst_23 = arith.constant 1.000000e+00 : f32
    %105 = vector.broadcast %cst_23 : f32 to vector<8x128xf32>
    %106 = arith.addf %105, %104 : vector<8x128xf32>
    %107 = arith.divf %105, %106 : vector<8x128xf32>
    %108 = vector.extract_strided_slice %95 {offsets = [0, 256], sizes = [8, 128], strides = [1, 1]} : vector<8x512xf32> to vector<8x128xf32>
    %109 = math.tanh %108 : vector<8x128xf32>
    %110 = vector.extract_strided_slice %95 {offsets = [0, 384], sizes = [8, 128], strides = [1, 1]} : vector<8x512xf32> to vector<8x128xf32>
    %111 = arith.negf %110 : vector<8x128xf32>
    %112 = math.exp %111 : vector<8x128xf32>
    %cst_24 = arith.constant 1.000000e+00 : f32
    %113 = vector.broadcast %cst_24 : f32 to vector<8x128xf32>
    %114 = arith.addf %113, %112 : vector<8x128xf32>
    %115 = arith.divf %113, %114 : vector<8x128xf32>
    %116 = arith.mulf %107, %90 : vector<8x128xf32>
    %117 = arith.mulf %101, %109 : vector<8x128xf32>
    %118 = arith.addf %116, %117 : vector<8x128xf32>
    %119 = math.tanh %118 : vector<8x128xf32>
    %120 = arith.mulf %115, %119 : vector<8x128xf32>
    %121 = vector.extract_strided_slice %5 {offsets = [32, 0], sizes = [8, 512], strides = [1, 1]} : vector<64x512xf32> to vector<8x512xf32>
    %cst_25 = arith.constant dense<0.000000e+00> : vector<8x512xf32>
    %122 = tpu.matmul %120, %6, %cst_25 {dimension_numbers = #tpu.dot_dimension_numbers<[1], [0], [0], [1], [0, 0, 1, 1], [], []>} : vector<8x128xf32>, vector<128x512xf32>, vector<8x512xf32> -> vector<8x512xf32>
    %123 = arith.addf %121, %122 : vector<8x512xf32>
    %124 = vector.extract_strided_slice %123 {offsets = [0, 0], sizes = [8, 128], strides = [1, 1]} : vector<8x512xf32> to vector<8x128xf32>
    %125 = arith.negf %124 : vector<8x128xf32>
    %126 = math.exp %125 : vector<8x128xf32>
    %cst_26 = arith.constant 1.000000e+00 : f32
    %127 = vector.broadcast %cst_26 : f32 to vector<8x128xf32>
    %128 = arith.addf %127, %126 : vector<8x128xf32>
    %129 = arith.divf %127, %128 : vector<8x128xf32>
    %130 = vector.extract_strided_slice %123 {offsets = [0, 128], sizes = [8, 128], strides = [1, 1]} : vector<8x512xf32> to vector<8x128xf32>
    %131 = arith.negf %130 : vector<8x128xf32>
    %132 = math.exp %131 : vector<8x128xf32>
    %cst_27 = arith.constant 1.000000e+00 : f32
    %133 = vector.broadcast %cst_27 : f32 to vector<8x128xf32>
    %134 = arith.addf %133, %132 : vector<8x128xf32>
    %135 = arith.divf %133, %134 : vector<8x128xf32>
    %136 = vector.extract_strided_slice %123 {offsets = [0, 256], sizes = [8, 128], strides = [1, 1]} : vector<8x512xf32> to vector<8x128xf32>
    %137 = math.tanh %136 : vector<8x128xf32>
    %138 = vector.extract_strided_slice %123 {offsets = [0, 384], sizes = [8, 128], strides = [1, 1]} : vector<8x512xf32> to vector<8x128xf32>
    %139 = arith.negf %138 : vector<8x128xf32>
    %140 = math.exp %139 : vector<8x128xf32>
    %cst_28 = arith.constant 1.000000e+00 : f32
    %141 = vector.broadcast %cst_28 : f32 to vector<8x128xf32>
    %142 = arith.addf %141, %140 : vector<8x128xf32>
    %143 = arith.divf %141, %142 : vector<8x128xf32>
    %144 = arith.mulf %135, %118 : vector<8x128xf32>
    %145 = arith.mulf %129, %137 : vector<8x128xf32>
    %146 = arith.addf %144, %145 : vector<8x128xf32>
    %147 = math.tanh %146 : vector<8x128xf32>
    %148 = arith.mulf %143, %147 : vector<8x128xf32>
    %149 = vector.extract_strided_slice %5 {offsets = [40, 0], sizes = [8, 512], strides = [1, 1]} : vector<64x512xf32> to vector<8x512xf32>
    %cst_29 = arith.constant dense<0.000000e+00> : vector<8x512xf32>
    %150 = tpu.matmul %148, %6, %cst_29 {dimension_numbers = #tpu.dot_dimension_numbers<[1], [0], [0], [1], [0, 0, 1, 1], [], []>} : vector<8x128xf32>, vector<128x512xf32>, vector<8x512xf32> -> vector<8x512xf32>
    %151 = arith.addf %149, %150 : vector<8x512xf32>
    %152 = vector.extract_strided_slice %151 {offsets = [0, 0], sizes = [8, 128], strides = [1, 1]} : vector<8x512xf32> to vector<8x128xf32>
    %153 = arith.negf %152 : vector<8x128xf32>
    %154 = math.exp %153 : vector<8x128xf32>
    %cst_30 = arith.constant 1.000000e+00 : f32
    %155 = vector.broadcast %cst_30 : f32 to vector<8x128xf32>
    %156 = arith.addf %155, %154 : vector<8x128xf32>
    %157 = arith.divf %155, %156 : vector<8x128xf32>
    %158 = vector.extract_strided_slice %151 {offsets = [0, 128], sizes = [8, 128], strides = [1, 1]} : vector<8x512xf32> to vector<8x128xf32>
    %159 = arith.negf %158 : vector<8x128xf32>
    %160 = math.exp %159 : vector<8x128xf32>
    %cst_31 = arith.constant 1.000000e+00 : f32
    %161 = vector.broadcast %cst_31 : f32 to vector<8x128xf32>
    %162 = arith.addf %161, %160 : vector<8x128xf32>
    %163 = arith.divf %161, %162 : vector<8x128xf32>
    %164 = vector.extract_strided_slice %151 {offsets = [0, 256], sizes = [8, 128], strides = [1, 1]} : vector<8x512xf32> to vector<8x128xf32>
    %165 = math.tanh %164 : vector<8x128xf32>
    %166 = vector.extract_strided_slice %151 {offsets = [0, 384], sizes = [8, 128], strides = [1, 1]} : vector<8x512xf32> to vector<8x128xf32>
    %167 = arith.negf %166 : vector<8x128xf32>
    %168 = math.exp %167 : vector<8x128xf32>
    %cst_32 = arith.constant 1.000000e+00 : f32
    %169 = vector.broadcast %cst_32 : f32 to vector<8x128xf32>
    %170 = arith.addf %169, %168 : vector<8x128xf32>
    %171 = arith.divf %169, %170 : vector<8x128xf32>
    %172 = arith.mulf %163, %146 : vector<8x128xf32>
    %173 = arith.mulf %157, %165 : vector<8x128xf32>
    %174 = arith.addf %172, %173 : vector<8x128xf32>
    %175 = math.tanh %174 : vector<8x128xf32>
    %176 = arith.mulf %171, %175 : vector<8x128xf32>
    %177 = vector.extract_strided_slice %5 {offsets = [48, 0], sizes = [8, 512], strides = [1, 1]} : vector<64x512xf32> to vector<8x512xf32>
    %cst_33 = arith.constant dense<0.000000e+00> : vector<8x512xf32>
    %178 = tpu.matmul %176, %6, %cst_33 {dimension_numbers = #tpu.dot_dimension_numbers<[1], [0], [0], [1], [0, 0, 1, 1], [], []>} : vector<8x128xf32>, vector<128x512xf32>, vector<8x512xf32> -> vector<8x512xf32>
    %179 = arith.addf %177, %178 : vector<8x512xf32>
    %180 = vector.extract_strided_slice %179 {offsets = [0, 0], sizes = [8, 128], strides = [1, 1]} : vector<8x512xf32> to vector<8x128xf32>
    %181 = arith.negf %180 : vector<8x128xf32>
    %182 = math.exp %181 : vector<8x128xf32>
    %cst_34 = arith.constant 1.000000e+00 : f32
    %183 = vector.broadcast %cst_34 : f32 to vector<8x128xf32>
    %184 = arith.addf %183, %182 : vector<8x128xf32>
    %185 = arith.divf %183, %184 : vector<8x128xf32>
    %186 = vector.extract_strided_slice %179 {offsets = [0, 128], sizes = [8, 128], strides = [1, 1]} : vector<8x512xf32> to vector<8x128xf32>
    %187 = arith.negf %186 : vector<8x128xf32>
    %188 = math.exp %187 : vector<8x128xf32>
    %cst_35 = arith.constant 1.000000e+00 : f32
    %189 = vector.broadcast %cst_35 : f32 to vector<8x128xf32>
    %190 = arith.addf %189, %188 : vector<8x128xf32>
    %191 = arith.divf %189, %190 : vector<8x128xf32>
    %192 = vector.extract_strided_slice %179 {offsets = [0, 256], sizes = [8, 128], strides = [1, 1]} : vector<8x512xf32> to vector<8x128xf32>
    %193 = math.tanh %192 : vector<8x128xf32>
    %194 = vector.extract_strided_slice %179 {offsets = [0, 384], sizes = [8, 128], strides = [1, 1]} : vector<8x512xf32> to vector<8x128xf32>
    %195 = arith.negf %194 : vector<8x128xf32>
    %196 = math.exp %195 : vector<8x128xf32>
    %cst_36 = arith.constant 1.000000e+00 : f32
    %197 = vector.broadcast %cst_36 : f32 to vector<8x128xf32>
    %198 = arith.addf %197, %196 : vector<8x128xf32>
    %199 = arith.divf %197, %198 : vector<8x128xf32>
    %200 = arith.mulf %191, %174 : vector<8x128xf32>
    %201 = arith.mulf %185, %193 : vector<8x128xf32>
    %202 = arith.addf %200, %201 : vector<8x128xf32>
    %203 = math.tanh %202 : vector<8x128xf32>
    %204 = arith.mulf %199, %203 : vector<8x128xf32>
    %205 = vector.extract_strided_slice %5 {offsets = [56, 0], sizes = [8, 512], strides = [1, 1]} : vector<64x512xf32> to vector<8x512xf32>
    %cst_37 = arith.constant dense<0.000000e+00> : vector<8x512xf32>
    %206 = tpu.matmul %204, %6, %cst_37 {dimension_numbers = #tpu.dot_dimension_numbers<[1], [0], [0], [1], [0, 0, 1, 1], [], []>} : vector<8x128xf32>, vector<128x512xf32>, vector<8x512xf32> -> vector<8x512xf32>
    %207 = arith.addf %205, %206 : vector<8x512xf32>
    %208 = vector.extract_strided_slice %207 {offsets = [0, 0], sizes = [8, 128], strides = [1, 1]} : vector<8x512xf32> to vector<8x128xf32>
    %209 = arith.negf %208 : vector<8x128xf32>
    %210 = math.exp %209 : vector<8x128xf32>
    %cst_38 = arith.constant 1.000000e+00 : f32
    %211 = vector.broadcast %cst_38 : f32 to vector<8x128xf32>
    %212 = arith.addf %211, %210 : vector<8x128xf32>
    %213 = arith.divf %211, %212 : vector<8x128xf32>
    %214 = vector.extract_strided_slice %207 {offsets = [0, 128], sizes = [8, 128], strides = [1, 1]} : vector<8x512xf32> to vector<8x128xf32>
    %215 = arith.negf %214 : vector<8x128xf32>
    %216 = math.exp %215 : vector<8x128xf32>
    %cst_39 = arith.constant 1.000000e+00 : f32
    %217 = vector.broadcast %cst_39 : f32 to vector<8x128xf32>
    %218 = arith.addf %217, %216 : vector<8x128xf32>
    %219 = arith.divf %217, %218 : vector<8x128xf32>
    %220 = vector.extract_strided_slice %207 {offsets = [0, 256], sizes = [8, 128], strides = [1, 1]} : vector<8x512xf32> to vector<8x128xf32>
    %221 = math.tanh %220 : vector<8x128xf32>
    %222 = vector.extract_strided_slice %207 {offsets = [0, 384], sizes = [8, 128], strides = [1, 1]} : vector<8x512xf32> to vector<8x128xf32>
    %223 = arith.negf %222 : vector<8x128xf32>
    %224 = math.exp %223 : vector<8x128xf32>
    %cst_40 = arith.constant 1.000000e+00 : f32
    %225 = vector.broadcast %cst_40 : f32 to vector<8x128xf32>
    %226 = arith.addf %225, %224 : vector<8x128xf32>
    %227 = arith.divf %225, %226 : vector<8x128xf32>
    %228 = arith.mulf %219, %202 : vector<8x128xf32>
    %229 = arith.mulf %213, %221 : vector<8x128xf32>
    %230 = arith.addf %228, %229 : vector<8x128xf32>
    %231 = math.tanh %230 : vector<8x128xf32>
    %232 = arith.mulf %227, %231 : vector<8x128xf32>
    %c0_41 = arith.constant 0 : index
    %c0_42 = arith.constant 0 : index
    %233 = vector.load %arg5[%c0_41, %c0_42] : memref<128x16xf32, #tpu.memory_space<vmem>>, vector<128x16xf32>
    %cst_43 = arith.constant dense<0.000000e+00> : vector<8x16xf32>
    %234 = tpu.matmul %232, %233, %cst_43 {dimension_numbers = #tpu.dot_dimension_numbers<[1], [0], [0], [1], [0, 0, 1, 1], [], []>} : vector<8x128xf32>, vector<128x16xf32>, vector<8x16xf32> -> vector<8x16xf32>
    %c0_44 = arith.constant 0 : index
    %c0_45 = arith.constant 0 : index
    %235 = vector.load %arg6[%c0_44, %c0_45] : memref<1x16xf32, #tpu.memory_space<vmem>>, vector<1x16xf32>
    %236 = vector.broadcast %235 : vector<1x16xf32> to vector<8x16xf32>
    %237 = arith.addf %234, %236 : vector<8x16xf32>
    %c0_46 = arith.constant 0 : index
    %c0_47 = arith.constant 0 : index
    %238 = vector.load %arg7[%c0_46, %c0_47] : memref<8x16xf32, #tpu.memory_space<vmem>>, vector<8x16xf32>
    tpu.vector_store %arg7[%c0_46, %c0_47], %237 {strides = array<i32>} : memref<8x16xf32, #tpu.memory_space<vmem>>, vector<8x16xf32>,
    return
  }
  func.func @transform_0(%arg0: i32) -> (i32, i32) {
    %c0_i32 = arith.constant 0 : i32
    %c0_i32_0 = arith.constant 0 : i32
    %c0_i32_1 = arith.constant 0 : i32
    return %c0_i32, %c0_i32_0 : i32, i32
  }
  func.func @transform_1(%arg0: i32) -> (i32, i32) {
    %c0_i32 = arith.constant 0 : i32
    %c0_i32_0 = arith.constant 0 : i32
    %c0_i32_1 = arith.constant 0 : i32
    return %c0_i32, %c0_i32_0 : i32, i32
  }
  func.func @transform_2(%arg0: i32) -> (i32, i32) {
    %c0_i32 = arith.constant 0 : i32
    %c0_i32_0 = arith.constant 0 : i32
    %c0_i32_1 = arith.constant 0 : i32
    return %c0_i32, %c0_i32_0 : i32, i32
  }
  func.func @transform_3(%arg0: i32) -> (i32, i32) {
    %c0_i32 = arith.constant 0 : i32
    %c0_i32_0 = arith.constant 0 : i32
    %c0_i32_1 = arith.constant 0 : i32
    return %c0_i32, %c0_i32_0 : i32, i32
  }
  func.func @transform_4(%arg0: i32) -> (i32, i32) {
    %c0_i32 = arith.constant 0 : i32
    %c0_i32_0 = arith.constant 0 : i32
    %c0_i32_1 = arith.constant 0 : i32
    return %c0_i32, %c0_i32_0 : i32, i32
  }
  func.func @transform_5(%arg0: i32) -> (i32, i32) {
    %c0_i32 = arith.constant 0 : i32
    %c0_i32_0 = arith.constant 0 : i32
    %c0_i32_1 = arith.constant 0 : i32
    return %c0_i32, %c0_i32_0 : i32, i32
  }
  func.func @transform_6(%arg0: i32) -> (i32, i32) {
    %c0_i32 = arith.constant 0 : i32
    %c0_i32_0 = arith.constant 0 : i32
    %c0_i32_1 = arith.constant 0 : i32
    return %c0_i32, %c0_i32_0 : i32, i32
  }
}

</mosaic_0001>

<bundles_post_ra>
// kernel: tpu_custom_call.1
= control target key start
LH: loop header
LB: loop body
LE: loop exit
PB: predicated region body
PF: predicated region fallthrough
CT: control target
= control target key end

     0   :  { %11 = vsyncpa [#allocation3], 0  ;;  %s3366_s0 = inlined_call_operand.vmem [shape: f32[64,64], index: 0, kind: input, shape index: {}]   ;;  %s3367_s1 = inlined_call_operand.hbm [shape: f32[64,512], index: 1, kind: input, shape index: {}]   ;;  %s3368_s2 = inlined_call_operand.hbm [shape: f32[128,512], index: 2, kind: input, shape index: {}]   ;;  %s3369_s3 = inlined_call_operand.vmem [shape: f32[1,512], index: 3, kind: input, shape index: {}]   ;;  %s3370_s4 = inlined_call_operand.vmem [shape: f32[128,16], index: 4, kind: input, shape index: {}]   ;;  %s3371_s5 = inlined_call_operand.vmem [shape: f32[1,16], index: 5, kind: input, shape index: {}]   ;;  %s3372_s6 = inlined_call_operand.hbm [shape: f32[8,16], index: 6, kind: output, shape index: {}]  }
   0x1   :  { %12 = vsyncpa [#allocation6], 0 }
   0x2   :  { %13 = vsyncpa [#allocation4], 0  ;;  %s2258_s21 = smov [#allocation2]  }
   0x3   :  { %s21_s22 = sshll.u32 %s2258_s21, 4  ;;  %s22_s22 = int_to_ptr.vmem [resolvable:$true] %s21_s22 }
   0x4   :  { %s2200_s23 = scalar_lea.vmem %s22_s22, 4096  ;;  %p2205_p1 = scmp.lt.s32.totalorder %s22_s22, %s22_s22 }
   0x5   :  { %p2201_p0 = scmp.ne.s32.totalorder %s22_s22, %s2200_s23  ;;  %p2206_p2 = scmp.lt.s32.totalorder %s2200_s23, %s2200_s23 }
   0x7   :  { %p2207_p3 = por %p2206_p2, %p2205_p1 }
   0x9   :  { %p2208_p4 = pnand %p2207_p3, %p2201_p0 }
   0xb   :  { %2211 = shalt.err (!%p2208_p4)
}
   0xc   :  { %s2259_s24 = smov 512   ;;  %s2260_s25 = smov 32  }
   0xd   :  { %27 = dma.hbm_to_vmem [thread:$0]  %s3367_s1, 4096, %s22_s22, [#allocation3], %s2259_s24, %s2259_s24, %s2260_s25  }
   0xe   :  { %s2261_s28 = smov [#allocation5]  }
   0xf   :  { %s33_s29 = sshll.u32 %s2261_s28, 4  ;;  %s34_s29 = int_to_ptr.vmem [resolvable:$true] %s33_s29 }
  0x10   :  { %s2220_s30 = scalar_lea.vmem %s34_s29, 8192  ;;  %p2225_p6 = scmp.lt.s32.totalorder %s34_s29, %s34_s29 }
  0x11   :  { %p2221_p5 = scmp.ne.s32.totalorder %s34_s29, %s2220_s30  ;;  %p2226_p7 = scmp.lt.s32.totalorder %s2220_s30, %s2220_s30 }
  0x13   :  { %p2227_p8 = por %p2226_p7, %p2225_p6 }
  0x15   :  { %p2228_p9 = pnand %p2227_p8, %p2221_p5 }
  0x17   :  { %2231 = shalt.err (!%p2228_p9)
}
  0x18   :  { %39 = dma.hbm_to_vmem [thread:$0]  %s3368_s2, 8192, %s34_s29, [#allocation6], %s2259_s24, %s2259_s24, %s2260_s25  }
  0x19   :  { %2252 = dma.done.wait [#allocation3], 4096  }
  0x1a   :  { %2253 = vsyncadd [#allocation3], 4294963200 }
  0x1b   :  { %2254 = dma.done.wait [#allocation6], 8192  }
  0x1c   :  { %2255 = vsyncadd [#allocation6], 4294959104  ;;  %v3373_v0 = vmov 0.0   ;;  %v89_v1 = vld [vmem:[#allocation2 + $0xe8] sm:$0xff]  ;;  %v91_v2 = vld [vmem:[#allocation2 + $0xf8] sm:$0xff]  ;;  %vm114_vm0 = vcmask 523264  }
  0x1d   :  { %203 = vmatprep.mubr.f32.mxu0 %v3373_v0  ;;  %316 = vmatprep.mubr.f32.mxu1 %v3373_v0  ;;  %v88_v3 = vld [vmem:[#allocation2 + $0xe0] sm:$0xff]  ;;  %v90_v4 = vld [vmem:[#allocation2 + $0xf0] sm:$0xff]  ;;  %v85_v5 = vld [vmem:[#allocation2 + $0xc8] sm:$0xff]  ;;  %vm2263_vm1 = vmmov 0   ;;  %s2264_s28 = smov [#allocation7]   ;;  %vm1882_vm2 = vcmask 130048  }
  0x1e   :  { %155 = vmatprep.subr.mxu0 %v89_v1  ;;  %268 = vmatprep.subr.mxu1 %v91_v2  ;;  %v87_v6 = vld [vmem:[#allocation2 + $0xd8] sm:$0xff]  ;;  %v84_v7 = vld [vmem:[#allocation2 + $0xc0] sm:$0xff]  ;;  %v86_v8 = vld [vmem:[#allocation2 + $0xd0] sm:$0xff]  ;;  %s1890_s29 = sshll.u32 %s2264_s28, 4  ;;  %s1891_s29 = int_to_ptr.vmem [resolvable:$true] %s1890_s29 }
  0x1f   :  { %156 = vmatpush1.msra.mxu0 %v88_v3  ;;  %269 = vmatpush1.msra.mxu1 %v90_v4  ;;  %v81_v9 = vld [vmem:[#allocation2 + $0xa8] sm:$0xff]  ;;  %v83_v10 = vld [vmem:[#allocation2 + $0xb8] sm:$0xff]  ;;  %v80_v11 = vld [vmem:[#allocation2 + $0xa0] sm:$0xff]  ;;  %s2232_s30 = scalar_lea.vmem %s1891_s29, 128  ;;  %p2237_p11 = scmp.lt.s32.totalorder %s1891_s29, %s1891_s29 }
  0x20   :  { %157 = vmatprep.subr.mxu0 %v85_v5  ;;  %270 = vmatprep.subr.mxu1 %v87_v6  ;;  %v82_v12 = vld [vmem:[#allocation2 + $0xb0] sm:$0xff]  ;;  %v77_v13 = vld [vmem:[#allocation2 + $0x88] sm:$0xff]  ;;  %v79_v14 = vld [vmem:[#allocation2 + $0x98] sm:$0xff]  ;;  %p2233_p10 = scmp.ne.s32.totalorder %s1891_s29, %s2232_s30  ;;  %p2238_p12 = scmp.lt.s32.totalorder %s2232_s30, %s2232_s30 }
  0x21   :  { %158 = vmatpush1.msra.mxu0 %v84_v7  ;;  %271 = vmatpush1.msra.mxu1 %v86_v8  ;;  %v76_v15 = vld [vmem:[#allocation2 + $0x80] sm:$0xff]  ;;  %v78_v16 = vld [vmem:[#allocation2 + $0x90] sm:$0xff]  ;;  %v73_v17 = vld [vmem:[#allocation2 + $0x68] sm:$0xff] }
  0x22   :  { %159 = vmatprep.subr.mxu0 %v81_v9  ;;  %272 = vmatprep.subr.mxu1 %v83_v10  ;;  %v75_v18 = vld [vmem:[#allocation2 + $0x78] sm:$0xff]  ;;  %v72_v19 = vld [vmem:[#allocation2 + $0x60] sm:$0xff]  ;;  %v74_v20 = vld [vmem:[#allocation2 + $0x70] sm:$0xff]  ;;  %p2239_p13 = por %p2238_p12, %p2237_p11 }
  0x23   :  { %160 = vmatpush1.msra.mxu0 %v80_v11  ;;  %273 = vmatpush1.msra.mxu1 %v82_v12  ;;  %v69_v21 = vld [vmem:[#allocation2 + $0x48] sm:$0xff]  ;;  %v71_v22 = vld [vmem:[#allocation2 + $0x58] sm:$0xff]  ;;  %v68_v23 = vld [vmem:[#allocation2 + $0x40] sm:$0xff] }
  0x24   :  { %161 = vmatprep.subr.mxu0 %v77_v13  ;;  %274 = vmatprep.subr.mxu1 %v79_v14  ;;  %v70_v24 = vld [vmem:[#allocation2 + $0x50] sm:$0xff]  ;;  %v65_v25 = vld [vmem:[#allocation2 + $0x28] sm:$0xff]  ;;  %v67_v26 = vld [vmem:[#allocation2 + $0x38] sm:$0xff]  ;;  %p2240_p0 = pnand %p2239_p13, %p2233_p10 }
  0x25   :  { %162 = vmatpush1.msra.mxu0 %v76_v15  ;;  %275 = vmatpush1.msra.mxu1 %v78_v16  ;;  %v64_v27 = vld [vmem:[#allocation2 + $0x20] sm:$0xff]  ;;  %v66_v28 = vld [vmem:[#allocation2 + $0x30] sm:$0xff]  ;;  %v61_v29 = vld [vmem:[#allocation2 + $0x8] sm:$0xff] }
  0x26   :  { %163 = vmatprep.subr.mxu0 %v73_v17  ;;  %276 = vmatprep.subr.mxu1 %v75_v18  ;;  %v63_v30 = vld [vmem:[#allocation2 + $0x18] sm:$0xff]  ;;  %v60_v31 = vld [vmem:[#allocation2] sm:$0xff]  ;;  %v62_v32 = vld [vmem:[#allocation2 + $0x10] sm:$0xff] }
  0x27   :  { %164 = vmatpush1.msra.mxu0 %v72_v19  ;;  %277 = vmatpush1.msra.mxu1 %v74_v20  ;;  %v52_v33 = vld [vmem:[%s3366_s0] sm:$0xff]  ;;  %v2311_v34 = vld [vmem:[#allocation5 + $0x1e8] sm:$0xff]  ;;  %v2313_v35 = vld [vmem:[#allocation5 + $0x1f8] sm:$0xff] }
  0x28   :  { %165 = vmatprep.subr.mxu0 %v69_v21  ;;  %278 = vmatprep.subr.mxu1 %v71_v22  ;;  %3461 = vst [vmem:[#allocation11_spill] sm:$0xff] %v2311_v34  ;;  %3462 = vst [vmem:[#allocation12_spill] sm:$0xff] %v2313_v35  ;;  %v2315_v36 = vld [vmem:[#allocation5 + $0x1e0] sm:$0xff]  ;;  %v2317_v37 = vld [vmem:[#allocation5 + $0x1f0] sm:$0xff] }
  0x29   :  { %166 = vmatpush1.msra.mxu0 %v68_v23  ;;  %279 = vmatpush1.msra.mxu1 %v70_v24  ;;  %v2321_v38 = vld [vmem:[#allocation5 + $0x1c8] sm:$0xff]  ;;  %v2323_v39 = vld [vmem:[#allocation5 + $0x1d8] sm:$0xff]  ;;  %v2329_v40 = vld [vmem:[#allocation5 + $0x1c0] sm:$0xff] }
  0x2a   :  { %167 = vmatprep.subr.mxu0 %v65_v25  ;;  %280 = vmatprep.subr.mxu1 %v67_v26  ;;  %v2331_v41 = vld [vmem:[#allocation5 + $0x1d0] sm:$0xff]  ;;  %v53_v42 = vld [vmem:[%s3366_s0 + $0x8] sm:$0xff]  ;;  %v2342_v44 = vld [vmem:[#allocation5 + $0x1b8] sm:$0xff] }
  0x2b   :  { %168 = vmatpush1.msra.mxu0 %v64_v27  ;;  %281 = vmatpush1.msra.mxu1 %v66_v28  ;;  %v2340_v43 = vld [vmem:[#allocation5 + $0x1a8] sm:$0xff]  ;;  %v2346_v45 = vld [vmem:[#allocation5 + $0x1a0] sm:$0xff]  ;;  %v2348_v46 = vld [vmem:[#allocation5 + $0x1b0] sm:$0xff] }
  0x2c   :  { %169 = vmatprep.subr.mxu0 %v61_v29  ;;  %282 = vmatprep.subr.mxu1 %v63_v30  ;;  %v2352_v47 = vld [vmem:[#allocation5 + $0x188] sm:$0xff]  ;;  %v2354_v48 = vld [vmem:[#allocation5 + $0x198] sm:$0xff]  ;;  %v2360_v49 = vld [vmem:[#allocation5 + $0x180] sm:$0xff] }
  0x2d   :  { %170 = vmatpush1.msra.mxu0 %v60_v31  ;;  %283 = vmatpush1.msra.mxu1 %v62_v32  ;;  %v2362_v50 = vld [vmem:[#allocation5 + $0x190] sm:$0xff]  ;;  %v2371_v52 = vld [vmem:[#allocation5 + $0x168] sm:$0xff]  ;;  %v2373_v53 = vld [vmem:[#allocation5 + $0x178] sm:$0xff] }
  0x2e   :  { %1900 = vmatmul.mubr.msk.f32.vlgmr.msra.gmra.mxu0 %vm114_vm0, %v52_v33  ;;  %1908 = vmatmul.mubr.msk.f32.vlgmr.msra.gmra.mxu1 %vm114_vm0, %v52_v33  ;;  %v54_v51 = vld [vmem:[%s3366_s0 + $0x10] sm:$0xff]  ;;  %v2377_v54 = vld [vmem:[#allocation5 + $0x160] sm:$0xff]  ;;  %v2383_v56 = vld [vmem:[#allocation5 + $0x148] sm:$0xff] }
  0x2f   :  { %429 = vmatprep.subr.mxu0 %v2311_v34  ;;  %500 = vmatprep.subr.mxu1 %v2313_v35  ;;  %v2379_v55 = vld [vmem:[#allocation5 + $0x170] sm:$0xff]  ;;  %v2385_v57 = vld [vmem:[#allocation5 + $0x158] sm:$0xff]  ;;  %v2391_v58 = vld [vmem:[#allocation5 + $0x140] sm:$0xff] }
  0x30   :  { %430 = vmatpush1.msra.mxu0 %v2315_v36  ;;  %501 = vmatpush1.msra.mxu1 %v2317_v37  ;;  %v2393_v59 = vld [vmem:[#allocation5 + $0x150] sm:$0xff]  ;;  %v55_v60 = vld [vmem:[%s3366_s0 + $0x18] sm:$0xff]  ;;  %v2402_v61 = vld [vmem:[#allocation5 + $0x128] sm:$0xff] }
  0x31   :  { %431 = vmatprep.subr.mxu0 %v2321_v38  ;;  %502 = vmatprep.subr.mxu1 %v2323_v39  ;;  %v2404_v62 = vld [vmem:[#allocation5 + $0x138] sm:$0xff]  ;;  %v2408_v63 = vld [vmem:[#allocation5 + $0x120] sm:$0xff]  ;;  %v2410_v1 = vld [vmem:[#allocation5 + $0x130] sm:$0xff] }
  0x32   :  { %209 = vmatprep.mubr.f32.mxu0 %v3373_v0  ;;  %322 = vmatprep.mubr.f32.mxu1 %v3373_v0  ;;  %v2414_v2 = vld [vmem:[#allocation5 + $0x108] sm:$0xff]  ;;  %v2416_v3 = vld [vmem:[#allocation5 + $0x118] sm:$0xff]  ;;  %v2422_v4 = vld [vmem:[#allocation5 + $0x100] sm:$0xff] }
  0x33   :  { %432 = vmatpush1.msra.mxu0 %v2329_v40  ;;  %503 = vmatpush1.msra.mxu1 %v2331_v41  ;;  %v2424_v5 = vld [vmem:[#allocation5 + $0x110] sm:$0xff]  ;;  %v56_v6 = vld [vmem:[%s3366_s0 + $0x20] sm:$0xff]  ;;  %v2433_v7 = vld [vmem:[#allocation5 + $0xe8] sm:$0xff] }
  0x34   :  { %1901 = vmatmul.mubr.msk.f32.gmra.mxu0 %vm114_vm0, %v53_v42  ;;  %1909 = vmatmul.mubr.msk.f32.gmra.mxu1 %vm114_vm0, %v53_v42  ;;  %v2435_v8 = vld [vmem:[#allocation5 + $0xf8] sm:$0xff]  ;;  %v2439_v9 = vld [vmem:[#allocation5 + $0xe0] sm:$0xff]  ;;  %v2441_v10 = vld [vmem:[#allocation5 + $0xf0] sm:$0xff] }
  0x35   :  { %433 = vmatprep.subr.mxu0 %v2340_v43  ;;  %504 = vmatprep.subr.mxu1 %v2342_v44  ;;  %v2445_v11 = vld [vmem:[#allocation5 + $0xc8] sm:$0xff]  ;;  %v2447_v12 = vld [vmem:[#allocation5 + $0xd8] sm:$0xff]  ;;  %v2453_v13 = vld [vmem:[#allocation5 + $0xc0] sm:$0xff] }
  0x36   :  { %434 = vmatpush1.msra.mxu0 %v2346_v45  ;;  %505 = vmatpush1.msra.mxu1 %v2348_v46  ;;  %v2455_v14 = vld [vmem:[#allocation5 + $0xd0] sm:$0xff]  ;;  %v57_v15 = vld [vmem:[%s3366_s0 + $0x28] sm:$0xff]  ;;  %v2466_v17 = vld [vmem:[#allocation5 + $0xb8] sm:$0xff] }
  0x37   :  { %435 = vmatprep.subr.mxu0 %v2352_v47  ;;  %506 = vmatprep.subr.mxu1 %v2354_v48  ;;  %v2464_v16 = vld [vmem:[#allocation5 + $0xa8] sm:$0xff]  ;;  %v2470_v18 = vld [vmem:[#allocation5 + $0xa0] sm:$0xff]  ;;  %v2472_v19 = vld [vmem:[#allocation5 + $0xb0] sm:$0xff] }
  0x38   :  { %215 = vmatprep.mubr.f32.mxu0 %v3373_v0  ;;  %328 = vmatprep.mubr.f32.mxu1 %v3373_v0  ;;  %v2476_v20 = vld [vmem:[#allocation5 + $0x88] sm:$0xff]  ;;  %v2478_v21 = vld [vmem:[#allocation5 + $0x98] sm:$0xff]  ;;  %v2484_v22 = vld [vmem:[#allocation5 + $0x80] sm:$0xff] }
  0x39   :  { %436 = vmatpush1.msra.mxu0 %v2360_v49  ;;  %507 = vmatpush1.msra.mxu1 %v2362_v50  ;;  %3463 = vst [vmem:[#allocation13_spill] sm:$0xff] %v2476_v20  ;;  %3464 = vst [vmem:[#allocation14_spill] sm:$0xff] %v2478_v21  ;;  %v2486_v23 = vld [vmem:[#allocation5 + $0x90] sm:$0xff]  ;;  %v2495_v25 = vld [vmem:[#allocation5 + $0x68] sm:$0xff] }
  0x3a   :  { %1902 = vmatmul.mubr.msk.f32.gmra.mxu0 %vm114_vm0, %v54_v51  ;;  %1910 = vmatmul.mubr.msk.f32.gmra.mxu1 %vm114_vm0, %v54_v51  ;;  %3465 = vst [vmem:[#allocation15_spill] sm:$0xff] %v2484_v22  ;;  %3466 = vst [vmem:[#allocation16_spill] sm:$0xff] %v2486_v23  ;;  %v58_v24 = vld [vmem:[%s3366_s0 + $0x30] sm:$0xff]  ;;  %v2497_v26 = vld [vmem:[#allocation5 + $0x78] sm:$0xff] }
  0x3b   :  { %437 = vmatprep.subr.mxu0 %v2371_v52  ;;  %508 = vmatprep.subr.mxu1 %v2373_v53  ;;  %3467 = vst [vmem:[#allocation17_spill] sm:$0xff] %v2495_v25  ;;  %3468 = vst [vmem:[#allocation18_spill] sm:$0xff] %v2497_v26  ;;  %v2501_v27 = vld [vmem:[#allocation5 + $0x60] sm:$0xff]  ;;  %v2503_v28 = vld [vmem:[#allocation5 + $0x70] sm:$0xff] }
  0x3c   :  { %438 = vmatpush1.msra.mxu0 %v2377_v54  ;;  %509 = vmatpush1.msra.mxu1 %v2379_v55  ;;  %3469 = vst [vmem:[#allocation19_spill] sm:$0xff] %v2501_v27  ;;  %3470 = vst [vmem:[#allocation20_spill] sm:$0xff] %v2503_v28  ;;  %v2507_v29 = vld [vmem:[#allocation5 + $0x48] sm:$0xff]  ;;  %v2509_v30 = vld [vmem:[#allocation5 + $0x58] sm:$0xff] }
  0x3d   :  { %439 = vmatprep.subr.mxu0 %v2383_v56  ;;  %510 = vmatprep.subr.mxu1 %v2385_v57  ;;  %3471 = vst [vmem:[#allocation21_spill] sm:$0xff] %v2507_v29  ;;  %3472 = vst [vmem:[#allocation22_spill] sm:$0xff] %v2509_v30  ;;  %v2515_v31 = vld [vmem:[#allocation5 + $0x40] sm:$0xff]  ;;  %v2517_v32 = vld [vmem:[#allocation5 + $0x50] sm:$0xff] }
  0x3e   :  { %221 = vmatprep.mubr.f32.mxu0 %v3373_v0  ;;  %334 = vmatprep.mubr.f32.mxu1 %v3373_v0  ;;  %3473 = vst [vmem:[#allocation23_spill] sm:$0xff] %v2515_v31  ;;  %3474 = vst [vmem:[#allocation24_spill] sm:$0xff] %v2517_v32  ;;  %v59_v33 = vld [vmem:[%s3366_s0 + $0x38] sm:$0xff]  ;;  %v2526_v42 = vld [vmem:[#allocation5 + $0x28] sm:$0xff] }
  0x3f   :  { %440 = vmatpush1.msra.mxu0 %v2391_v58  ;;  %511 = vmatpush1.msra.mxu1 %v2393_v59  ;;  %3475 = vst [vmem:[#allocation25_spill] sm:$0xff] %v2526_v42  ;;  %v2528_v51 = vld [vmem:[#allocation5 + $0x38] sm:$0xff] }
  0x40   :  { %1903 = vmatmul.mubr.msk.f32.gmra.mxu0 %vm114_vm0, %v55_v60  ;;  %1911 = vmatmul.mubr.msk.f32.gmra.mxu1 %vm114_vm0, %v55_v60  ;;  %3476 = vst [vmem:[#allocation26_spill] sm:$0xff] %v2528_v51  ;;  %v2532_v60 = vld [vmem:[#allocation5 + $0x20] sm:$0xff] }
  0x41   :  { %441 = vmatprep.subr.mxu0 %v2402_v61  ;;  %512 = vmatprep.subr.mxu1 %v2404_v62  ;;  %3477 = vst [vmem:[#allocation27_spill] sm:$0xff] %v2532_v60 }
  0x42   :  { %442 = vmatpush1.msra.mxu0 %v2408_v63  ;;  %513 = vmatpush1.msra.mxu1 %v2410_v1 }
  0x43   :  { %443 = vmatprep.subr.mxu0 %v2414_v2  ;;  %514 = vmatprep.subr.mxu1 %v2416_v3 }
  0x44   :  { %227 = vmatprep.mubr.f32.mxu0 %v3373_v0  ;;  %340 = vmatprep.mubr.f32.mxu1 %v3373_v0 }
  0x45   :  { %444 = vmatpush1.msra.mxu0 %v2422_v4  ;;  %515 = vmatpush1.msra.mxu1 %v2424_v5 }
  0x46   :  { %1904 = vmatmul.mubr.msk.f32.gmra.mxu0 %vm114_vm0, %v56_v6  ;;  %1912 = vmatmul.mubr.msk.f32.gmra.mxu1 %vm114_vm0, %v56_v6  ;;  %v2534_v6 = vld [vmem:[#allocation5 + $0x30] sm:$0xff] }
  0x47   :  { %445 = vmatprep.subr.mxu0 %v2433_v7  ;;  %516 = vmatprep.subr.mxu1 %v2435_v8  ;;  %3478 = vst [vmem:[#allocation28_spill] sm:$0xff] %v2534_v6 }
  0x48   :  { %446 = vmatpush1.msra.mxu0 %v2439_v9  ;;  %517 = vmatpush1.msra.mxu1 %v2441_v10 }
  0x49   :  { %447 = vmatprep.subr.mxu0 %v2445_v11  ;;  %518 = vmatprep.subr.mxu1 %v2447_v12 }
  0x4a   :  { %233 = vmatprep.mubr.f32.mxu0 %v3373_v0  ;;  %346 = vmatprep.mubr.f32.mxu1 %v3373_v0 }
  0x4b   :  { %448 = vmatpush1.msra.mxu0 %v2453_v13  ;;  %519 = vmatpush1.msra.mxu1 %v2455_v14 }
  0x4c   :  { %1905 = vmatmul.mubr.msk.f32.gmra.mxu0 %vm114_vm0, %v57_v15  ;;  %1913 = vmatmul.mubr.msk.f32.gmra.mxu1 %vm114_vm0, %v57_v15  ;;  %v2538_v15 = vld [vmem:[#allocation5 + $0x8] sm:$0xff] }
  0x4d   :  { %449 = vmatprep.subr.mxu0 %v2464_v16  ;;  %520 = vmatprep.subr.mxu1 %v2466_v17  ;;  %3479 = vst [vmem:[#allocation29_spill] sm:$0xff] %v2538_v15 }
  0x4e   :  { %450 = vmatpush1.msra.mxu0 %v2470_v18  ;;  %521 = vmatpush1.msra.mxu1 %v2472_v19 }
  0x4f   :  { %451 = vmatprep.subr.mxu0 %v2476_v20  ;;  %522 = vmatprep.subr.mxu1 %v2478_v21 }
  0x50   :  { %239 = vmatprep.mubr.f32.mxu0 %v3373_v0  ;;  %352 = vmatprep.mubr.f32.mxu1 %v3373_v0 }
  0x51   :  { %452 = vmatpush1.msra.mxu0 %v2484_v22  ;;  %523 = vmatpush1.msra.mxu1 %v2486_v23 }
  0x52   :  { %1906 = vmatmul.mubr.msk.f32.gmra.mxu0 %vm114_vm0, %v58_v24  ;;  %1914 = vmatmul.mubr.msk.f32.gmra.mxu1 %vm114_vm0, %v58_v24  ;;  %v2540_v24 = vld [vmem:[#allocation5 + $0x18] sm:$0xff] }
  0x53   :  { %453 = vmatprep.subr.mxu0 %v2495_v25  ;;  %524 = vmatprep.subr.mxu1 %v2497_v26  ;;  %3480 = vst [vmem:[#allocation30_spill] sm:$0xff] %v2540_v24 }
  0x54   :  { %454 = vmatpush1.msra.mxu0 %v2501_v27  ;;  %525 = vmatpush1.msra.mxu1 %v2503_v28 }
  0x55   :  { %455 = vmatprep.subr.mxu0 %v2507_v29  ;;  %526 = vmatprep.subr.mxu1 %v2509_v30 }
  0x56   :  { %245 = vmatprep.mubr.f32.mxu0 %v3373_v0  ;;  %358 = vmatprep.mubr.f32.mxu1 %v3373_v0  ;;  %v2544_v0 = vld [vmem:[#allocation5] sm:$0xff] }
  0x57   :  { %456 = vmatpush1.msra.mxu0 %v2515_v31  ;;  %527 = vmatpush1.msra.mxu1 %v2517_v32  ;;  %3481 = vst [vmem:[#allocation31_spill] sm:$0xff] %v2544_v0  ;;  %v2548_v32 = vld [vmem:[#allocation5 + $0x10] sm:$0xff] }
  0x58   :  { %1907 = vmatmul.mubr.msk.f32.gmra.mxu0 %vm114_vm0, %v59_v33  ;;  %1915 = vmatmul.mubr.msk.f32.gmra.mxu1 %vm114_vm0, %v59_v33  ;;  %3482 = vst [vmem:[#allocation32_spill] sm:$0xff] %v2548_v32  ;;  %v3483_v33 = vmov 0.0  }
  0x59   :  { %457 = vmatprep.subr.mxu0 %v2526_v42  ;;  %528 = vmatprep.subr.mxu1 %v2528_v51 }
  0x5a   :  { %458 = vmatpush1.msra.mxu0 %v2532_v60  ;;  %529 = vmatpush1.msra.mxu1 %v2534_v6 }
  0x5b   :  { %459 = vmatprep.subr.mxu0 %v2538_v15  ;;  %530 = vmatprep.subr.mxu1 %v2540_v24 }
  0x5c   :  { %460 = vmatpush1.msra.mxu0 %v2544_v0  ;;  %493 = vmatprep.mubr.f32.mxu0 %v3483_v33 }
  0x5d   :  { %531 = vmatpush1.msra.mxu1 %v2548_v32  ;;  %564 = vmatprep.mubr.f32.mxu1 %v3483_v33 }
  0x5e   :  { %494 = vmatmul.mubr.f32.vlgmr.msra.gmra.mxu0 %v3483_v33  ;;  %565 = vmatmul.mubr.f32.vlgmr.msra.gmra.mxu1 %v3483_v33 }
  0x5f   :  { %599 = vmatprep.subr.mxu0 %v2311_v34  ;;  %670 = vmatprep.subr.mxu1 %v2313_v35 }
  0x60   :  { %600 = vmatpush1.msra.mxu0 %v2315_v36  ;;  %671 = vmatpush1.msra.mxu1 %v2317_v37 }
  0x61   :  { %601 = vmatprep.subr.mxu0 %v2321_v38  ;;  %672 = vmatprep.subr.mxu1 %v2323_v39 }
  0x62   :  { %602 = vmatpush1.msra.mxu0 %v2329_v40  ;;  %673 = vmatpush1.msra.mxu1 %v2331_v41 }
  0x63   :  { %603 = vmatprep.subr.mxu0 %v2340_v43  ;;  %674 = vmatprep.subr.mxu1 %v2342_v44 }
  0x64   :  { %604 = vmatpush1.msra.mxu0 %v2346_v45  ;;  %675 = vmatpush1.msra.mxu1 %v2348_v46 }
  0x65   :  { %605 = vmatprep.subr.mxu0 %v2352_v47  ;;  %676 = vmatprep.subr.mxu1 %v2354_v48 }
  0x66   :  { %606 = vmatpush1.msra.mxu0 %v2360_v49  ;;  %677 = vmatpush1.msra.mxu1 %v2362_v50 }
  0x67   :  { %607 = vmatprep.subr.mxu0 %v2371_v52  ;;  %678 = vmatprep.subr.mxu1 %v2373_v53 }
  0x68   :  { %608 = vmatpush1.msra.mxu0 %v2377_v54  ;;  %679 = vmatpush1.msra.mxu1 %v2379_v55 }
  0x69   :  { %609 = vmatprep.subr.mxu0 %v2383_v56  ;;  %680 = vmatprep.subr.mxu1 %v2385_v57 }
  0x6a   :  { %610 = vmatpush1.msra.mxu0 %v2391_v58  ;;  %681 = vmatpush1.msra.mxu1 %v2393_v59 }
  0x6b   :  { %611 = vmatprep.subr.mxu0 %v2402_v61  ;;  %682 = vmatprep.subr.mxu1 %v2404_v62 }
  0x6c   :  { %612 = vmatpush1.msra.mxu0 %v2408_v63  ;;  %683 = vmatpush1.msra.mxu1 %v2410_v1 }
  0x6d   :  { %613 = vmatprep.subr.mxu0 %v2414_v2  ;;  %684 = vmatprep.subr.mxu1 %v2416_v3 }
  0x6e   :  { %614 = vmatpush1.msra.mxu0 %v2422_v4  ;;  %685 = vmatpush1.msra.mxu1 %v2424_v5 }
  0x6f   :  { %615 = vmatprep.subr.mxu0 %v2433_v7  ;;  %686 = vmatprep.subr.mxu1 %v2435_v8 }
  0x70   :  { %616 = vmatpush1.msra.mxu0 %v2439_v9  ;;  %687 = vmatpush1.msra.mxu1 %v2441_v10 }
  0x71   :  { %617 = vmatprep.subr.mxu0 %v2445_v11  ;;  %688 = vmatprep.subr.mxu1 %v2447_v12 }
  0x72   :  { %618 = vmatpush1.msra.mxu0 %v2453_v13  ;;  %689 = vmatpush1.msra.mxu1 %v2455_v14 }
  0x73   :  { %619 = vmatprep.subr.mxu0 %v2464_v16  ;;  %690 = vmatprep.subr.mxu1 %v2466_v17 }
  0x74   :  { %620 = vmatpush1.msra.mxu0 %v2470_v18  ;;  %691 = vmatpush1.msra.mxu1 %v2472_v19 }
  0x75   :  { %621 = vmatprep.subr.mxu0 %v2476_v20  ;;  %692 = vmatprep.subr.mxu1 %v2478_v21  ;;  %v3484_v20 = vld [vmem:[#allocation24_spill] sm:$0xff] }
  0x76   :  { %622 = vmatpush1.msra.mxu0 %v2484_v22  ;;  %693 = vmatpush1.msra.mxu1 %v2486_v23 }
  0x77   :  { %623 = vmatprep.subr.mxu0 %v2495_v25  ;;  %694 = vmatprep.subr.mxu1 %v2497_v26 }
  0x78   :  { %624 = vmatpush1.msra.mxu0 %v2501_v27  ;;  %695 = vmatpush1.msra.mxu1 %v2503_v28 }
  0x79   :  { %625 = vmatprep.subr.mxu0 %v2507_v29  ;;  %696 = vmatprep.subr.mxu1 %v2509_v30 }
  0x7a   :  { %626 = vmatpush1.msra.mxu0 %v2515_v31  ;;  %697 = vmatpush1.msra.mxu1 %v3484_v20 }
  0x7b   :  { %627 = vmatprep.subr.mxu0 %v2526_v42  ;;  %698 = vmatprep.subr.mxu1 %v2528_v51  ;;  %v94_v51 = vlaneseq }
  0x7c   :  { %628 = vmatpush1.msra.mxu0 %v2532_v60  ;;  %699 = vmatpush1.msra.mxu1 %v2534_v6 }
  0x7d   :  { %629 = vmatprep.subr.mxu0 %v2538_v15  ;;  %700 = vmatprep.subr.mxu1 %v2540_v24  ;;  %v95_v60 = vshrl.u32 %v94_v51, 7 }
  0x7e   :  { %630 = vmatpush1.msra.mxu0 %v2544_v0  ;;  %663 = vmatprep.mubr.f32.mxu0 %v3483_v33  ;;  %v92_v0 = vld [vmem:[%s3369_s3] sm:$0xf] }
  0x7f   :  { %701 = vmatpush1.msra.mxu1 %v2548_v32  ;;  %734 = vmatprep.mubr.f32.mxu1 %v3483_v33  ;;  %v96_v15 = vsub.s32 0, %v95_v60  ;;  %v104_v24 = vsub.s32 2, %v95_v60  ;;  %v100_v33 = vsub.s32 1, %v95_v60 }
  0x80   :  { %769 = vmatprep.subr.mxu0 %v2311_v34  ;;  %840 = vmatprep.subr.mxu1 %v2313_v35  ;;  %v108_v34 = vsub.s32 3, %v95_v60 }
  0x81   :  { %v97_v31 = vrot.slane %v92_v0, %v96_v15  ;;  %v2637_v35 = vrot.slane %v92_v0, %v104_v24  ;;  %v101_v29 = vrot.slane %v92_v0, %v100_v33 }
  0x82   :  { %v2639_v28 = vrot.slane %v92_v0, %v108_v34 }
  0xee   :  { %v2626_v42 = vpop.f32.mrf.mxu0  ;;  %v2628_v6 = vpop.f32.mrf.mxu1 }
  0xf0   :  { %v2633_v20 = vpop.f32.mrf.mxu0  ;;  %v2635_v32 = vpop.f32.mrf.mxu1 }
  0xf4   :  { %v211_v51 = vpop.f32.mrf.mxu0  ;;  %v324_v30 = vpop.f32.mrf.mxu1 }
  0xf5   :  { %v2641_v27 = vadd.f32 %v211_v51, %v97_v31  ;;  %v2644_v26 = vadd.f32 %v324_v30, %v2637_v35 }
  0xf6   :  { %v213_v25 = vpop.f32.mrf.mxu0  ;;  %v326_v23 = vpop.f32.mrf.mxu1 }
  0xf7   :  { %3485 = vst [vmem:[#allocation33_spill] sm:$0xff] %v2641_v27  ;;  %3486 = vst [vmem:[#allocation34_spill] sm:$0xff] %v2644_v26  ;;  %v2646_v22 = vadd.f32 %v213_v25, %v101_v29  ;;  %v2649_v21 = vadd.f32 %v326_v23, %v2639_v28 }
  0xf9   :  { %3487 = vst [vmem:[#allocation35_spill] sm:$0xff] %v2646_v22  ;;  %3488 = vst [vmem:[#allocation36_spill] sm:$0xff] %v2649_v21 }
  0xfa   :  { %v217_v60 = vpop.f32.mrf.mxu0  ;;  %v330_v15 = vpop.f32.mrf.mxu1 }
  0xfb   :  { %v2651_v24 = vadd.f32 %v217_v60, %v97_v31  ;;  %v2654_v33 = vadd.f32 %v330_v15, %v2637_v35 }
  0xfc   :  { %v219_v0 = vpop.f32.mrf.mxu0  ;;  %v332_v34 = vpop.f32.mrf.mxu1 }
  0xfd   :  { %3489 = vst [vmem:[#allocation37_spill] sm:$0xff] %v2651_v24  ;;  %3490 = vst [vmem:[#allocation38_spill] sm:$0xff] %v2654_v33  ;;  %v2656_v51 = vadd.f32 %v219_v0, %v101_v29  ;;  %v2659_v30 = vadd.f32 %v332_v34, %v2639_v28 }
  0xff   :  { %3491 = vst [vmem:[#allocation39_spill] sm:$0xff] %v2656_v51  ;;  %3492 = vst [vmem:[#allocation40_spill] sm:$0xff] %v2659_v30 }
 0x100   :  { %v223_v26 = vpop.f32.mrf.mxu0  ;;  %v336_v25 = vpop.f32.mrf.mxu1 }
 0x101   :  { %v2661_v22 = vadd.f32 %v223_v26, %v97_v31  ;;  %v2664_v23 = vadd.f32 %v336_v25, %v2637_v35 }
 0x102   :  { %v225_v21 = vpop.f32.mrf.mxu0  ;;  %v338_v60 = vpop.f32.mrf.mxu1 }
 0x103   :  { %3493 = vst [vmem:[#allocation41_spill] sm:$0xff] %v2661_v22  ;;  %3494 = vst [vmem:[#allocation42_spill] sm:$0xff] %v2664_v23  ;;  %v2666_v24 = vadd.f32 %v225_v21, %v101_v29  ;;  %v2669_v15 = vadd.f32 %v338_v60, %v2639_v28 }
 0x105   :  { %3495 = vst [vmem:[#allocation43_spill] sm:$0xff] %v2666_v24  ;;  %3496 = vst [vmem:[#allocation44_spill] sm:$0xff] %v2669_v15 }
 0x106   :  { %v229_v33 = vpop.f32.mrf.mxu0  ;;  %v342_v0 = vpop.f32.mrf.mxu1 }
 0x107   :  { %v2671_v51 = vadd.f32 %v229_v33, %v97_v31  ;;  %v2674_v34 = vadd.f32 %v342_v0, %v2637_v35 }
 0x108   :  { %v231_v30 = vpop.f32.mrf.mxu0  ;;  %v344_v26 = vpop.f32.mrf.mxu1 }
 0x109   :  { %3497 = vst [vmem:[#allocation45_spill] sm:$0xff] %v2671_v51  ;;  %3498 = vst [vmem:[#allocation46_spill] sm:$0xff] %v2674_v34  ;;  %v2676_v22 = vadd.f32 %v231_v30, %v101_v29  ;;  %v2679_v25 = vadd.f32 %v344_v26, %v2639_v28 }
 0x10b   :  { %3499 = vst [vmem:[#allocation47_spill] sm:$0xff] %v2676_v22  ;;  %3500 = vst [vmem:[#allocation48_spill] sm:$0xff] %v2679_v25 }
 0x10c   :  { %v235_v23 = vpop.f32.mrf.mxu0  ;;  %v348_v21 = vpop.f32.mrf.mxu1 }
 0x10d   :  { %v2681_v24 = vadd.f32 %v235_v23, %v97_v31  ;;  %v2684_v60 = vadd.f32 %v348_v21, %v2637_v35 }
 0x10e   :  { %v237_v15 = vpop.f32.mrf.mxu0  ;;  %v350_v33 = vpop.f32.mrf.mxu1 }
 0x10f   :  { %3501 = vst [vmem:[#allocation49_spill] sm:$0xff] %v2681_v24  ;;  %3502 = vst [vmem:[#allocation50_spill] sm:$0xff] %v2684_v60  ;;  %v2686_v51 = vadd.f32 %v237_v15, %v101_v29  ;;  %v2689_v0 = vadd.f32 %v350_v33, %v2639_v28 }
 0x111   :  { %3503 = vst [vmem:[#allocation51_spill] sm:$0xff] %v2686_v51  ;;  %3504 = vst [vmem:[#allocation52_spill] sm:$0xff] %v2689_v0 }
 0x112   :  { %v241_v34 = vpop.f32.mrf.mxu0  ;;  %v354_v30 = vpop.f32.mrf.mxu1 }
 0x113   :  { %v2691_v22 = vadd.f32 %v241_v34, %v97_v31  ;;  %v2694_v26 = vadd.f32 %v354_v30, %v2637_v35 }
 0x114   :  { %v243_v25 = vpop.f32.mrf.mxu0  ;;  %v356_v23 = vpop.f32.mrf.mxu1 }
 0x115   :  { %3505 = vst [vmem:[#allocation53_spill] sm:$0xff] %v2691_v22  ;;  %3506 = vst [vmem:[#allocation54_spill] sm:$0xff] %v2694_v26  ;;  %v2696_v24 = vadd.f32 %v243_v25, %v101_v29  ;;  %v2699_v21 = vadd.f32 %v356_v23, %v2639_v28  ;;  %v206_v25 = vadd.f32 %v2626_v42, %v97_v31 }
 0x116   :  { %v208_v23 = vadd.f32 %v2633_v20, %v101_v29 }
 0x117   :  { %3507 = vst [vmem:[#allocation55_spill] sm:$0xff] %v2696_v24  ;;  %3508 = vst [vmem:[#allocation56_spill] sm:$0xff] %v2699_v21 }
 0x118   :  { %v247_v60 = vpop.f32.mrf.mxu0  ;;  %v360_v15 = vpop.f32.mrf.mxu1 }
 0x119   :  { %v2701_v51 = vadd.f32 %v247_v60, %v97_v31  ;;  %v2704_v33 = vadd.f32 %v360_v15, %v2637_v35 }
 0x11a   :  { %v249_v0 = vpop.f32.mrf.mxu0  ;;  %v362_v34 = vpop.f32.mrf.mxu1 }
 0x11b   :  { %3509 = vst [vmem:[#allocation57_spill] sm:$0xff] %v2701_v51  ;;  %3510 = vst [vmem:[#allocation58_spill] sm:$0xff] %v2704_v33  ;;  %v2706_v22 = vadd.f32 %v249_v0, %v101_v29  ;;  %v2709_v30 = vadd.f32 %v362_v34, %v2639_v28  ;;  %v321_v0 = vadd.f32 %v2635_v32, %v2639_v28 }
 0x11c   :  { %v319_v34 = vadd.f32 %v2628_v6, %v2637_v35 }
 0x11d   :  { %3511 = vst [vmem:[#allocation59_spill] sm:$0xff] %v2706_v22  ;;  %3512 = vst [vmem:[#allocation60_spill] sm:$0xff] %v2709_v30 }
 0x11e   :  { %v495_v26 = vpop.f32.mrf.mxu0  ;;  %v566_v51 = vpop.f32.mrf.mxu1 }
 0x11f   :  { %v571_v21 = vadd.f32 %v495_v26, %v206_v25  ;;  %v573_v30 = vadd.f32 %v566_v51, %v319_v34  ;;  %v3513_v51 = vld [vmem:[#allocation13_spill] sm:$0xff]  ;;  %v3518_v34 = vld [vmem:[#allocation18_spill] sm:$0xff] }
 0x120   :  { %v497_v24 = vpop.f32.mrf.mxu0  ;;  %v568_v33 = vpop.f32.mrf.mxu1 }
 0x121   :  { %v1916_v27 = vmul.f32 -1.442695, %v571_v21  ;;  %v572_v60 = vadd.f32 %v497_v24, %v208_v23  ;;  %v574_v22 = vadd.f32 %v568_v33, %v321_v0  ;;  %v3517_v0 = vld [vmem:[#allocation17_spill] sm:$0xff] }
 0x123   :  { %2000 = vpow2.f32 %v1916_v27  ;;  %v1917_v15 = vmul.f32 -1.442695, %v572_v60  ;;  %v1918_v31 = vmul.f32 -1.442695, %v574_v22  ;;  %v3515_v60 = vld [vmem:[#allocation15_spill] sm:$0xff] }
 0x125   :  { %2002 = vpow2.f32 %v1917_v15  ;;  %v3516_v15 = vld [vmem:[#allocation16_spill] sm:$0xff] }
 0x126   :  { %2004 = vpow2.f32 %v1918_v31  ;;  %v3519_v31 = vld [vmem:[#allocation19_spill] sm:$0xff] }
 0x130   :  { %v2001_v42 = vpop.eup %2000 }
 0x131   :  { %v578_v20 = vadd.f32 1.0, %v2001_v42  ;;  %v3520_v42 = vld [vmem:[#allocation20_spill] sm:$0xff] }
 0x132   :  { %v2003_v29 = vpop.eup %2002 }
 0x133   :  { %2006 = vrcp.f32 %v578_v20  ;;  %v584_v24 = vadd.f32 1.0, %v2003_v29  ;;  %v2005_v27 = vpop.eup %2004  ;;  %v3521_v20 = vld [vmem:[#allocation21_spill] sm:$0xff]  ;;  %v3522_v29 = vld [vmem:[#allocation22_spill] sm:$0xff] }
 0x134   :  { %2008 = vtanh.f32 %v573_v30  ;;  %v591_v23 = vadd.f32 1.0, %v2005_v27  ;;  %v3514_v30 = vld [vmem:[#allocation14_spill] sm:$0xff]  ;;  %v3524_v27 = vld [vmem:[#allocation24_spill] sm:$0xff] }
 0x135   :  { %2010 = vrcp.f32 %v584_v24  ;;  %v3523_v24 = vld [vmem:[#allocation23_spill] sm:$0xff] }
 0x136   :  { %2012 = vrcp.f32 %v591_v23  ;;  %v3528_v23 = vld [vmem:[#allocation28_spill] sm:$0xff] }
 0x140   :  { %v2007_v26 = vpop.eup %2006 }
 0x141   :  { %v2009_v21 = vpop.eup %2008 }
 0x142   :  { %v2011_v25 = vpop.eup %2010  ;;  %v595_v32 = vmul.f32 %v2009_v21, %v2007_v26  ;;  %v3525_v26 = vld [vmem:[#allocation25_spill] sm:$0xff]  ;;  %v3526_v21 = vld [vmem:[#allocation26_spill] sm:$0xff] }
 0x143   :  { %v594_v28 = vmul.f32 0.0, %v2011_v25  ;;  %v2013_v35 = vpop.eup %2012  ;;  %v3527_v25 = vld [vmem:[#allocation27_spill] sm:$0xff] }
 0x145   :  { %v2717_v33 = vadd.f32 %v595_v32, %v594_v28  ;;  %v3529_v28 = vld [vmem:[#allocation29_spill] sm:$0xff]  ;;  %v3530_v32 = vld [vmem:[#allocation30_spill] sm:$0xff] }
 0x147   :  { %2014 = vtanh.f32 %v2717_v33 }
 0x154   :  { %v2015_v22 = vpop.eup %2014 }
 0x155   :  { %v598_v6 = vmul.f32 %v2015_v22, %v2013_v35  ;;  %v3531_v35 = vld [vmem:[#allocation31_spill] sm:$0xff]  ;;  %v3532_v22 = vmov 0.0  }
 0x157   :  { %664 = vmatmul.mubr.f32.vlgmr.msra.gmra.mxu0 %v598_v6  ;;  %735 = vmatmul.mubr.f32.vlgmr.msra.gmra.mxu1 %v598_v6  ;;  %v3533_v6 = vld [vmem:[#allocation32_spill] sm:$0xff] }
 0x158   :  { %770 = vmatpush1.msra.mxu0 %v2315_v36  ;;  %841 = vmatpush1.msra.mxu1 %v2317_v37 }
 0x159   :  { %771 = vmatprep.subr.mxu0 %v2321_v38  ;;  %842 = vmatprep.subr.mxu1 %v2323_v39 }
 0x15a   :  { %772 = vmatpush1.msra.mxu0 %v2329_v40  ;;  %843 = vmatpush1.msra.mxu1 %v2331_v41 }
 0x15b   :  { %773 = vmatprep.subr.mxu0 %v2340_v43  ;;  %844 = vmatprep.subr.mxu1 %v2342_v44 }
 0x15c   :  { %774 = vmatpush1.msra.mxu0 %v2346_v45  ;;  %845 = vmatpush1.msra.mxu1 %v2348_v46 }
 0x15d   :  { %775 = vmatprep.subr.mxu0 %v2352_v47  ;;  %846 = vmatprep.subr.mxu1 %v2354_v48 }
 0x15e   :  { %776 = vmatpush1.msra.mxu0 %v2360_v49  ;;  %847 = vmatpush1.msra.mxu1 %v2362_v50 }
 0x15f   :  { %777 = vmatprep.subr.mxu0 %v2371_v52  ;;  %848 = vmatprep.subr.mxu1 %v2373_v53 }
 0x160   :  { %778 = vmatpush1.msra.mxu0 %v2377_v54  ;;  %849 = vmatpush1.msra.mxu1 %v2379_v55 }
 0x161   :  { %779 = vmatprep.subr.mxu0 %v2383_v56  ;;  %850 = vmatprep.subr.mxu1 %v2385_v57 }
 0x162   :  { %780 = vmatpush1.msra.mxu0 %v2391_v58  ;;  %851 = vmatpush1.msra.mxu1 %v2393_v59 }
 0x163   :  { %781 = vmatprep.subr.mxu0 %v2402_v61  ;;  %852 = vmatprep.subr.mxu1 %v2404_v62 }
 0x164   :  { %782 = vmatpush1.msra.mxu0 %v2408_v63  ;;  %853 = vmatpush1.msra.mxu1 %v2410_v1 }
 0x165   :  { %783 = vmatprep.subr.mxu0 %v2414_v2  ;;  %854 = vmatprep.subr.mxu1 %v2416_v3 }
 0x166   :  { %784 = vmatpush1.msra.mxu0 %v2422_v4  ;;  %855 = vmatpush1.msra.mxu1 %v2424_v5 }
 0x167   :  { %785 = vmatprep.subr.mxu0 %v2433_v7  ;;  %856 = vmatprep.subr.mxu1 %v2435_v8 }
 0x168   :  { %786 = vmatpush1.msra.mxu0 %v2439_v9  ;;  %857 = vmatpush1.msra.mxu1 %v2441_v10 }
 0x169   :  { %787 = vmatprep.subr.mxu0 %v2445_v11  ;;  %858 = vmatprep.subr.mxu1 %v2447_v12 }
 0x16a   :  { %788 = vmatpush1.msra.mxu0 %v2453_v13  ;;  %859 = vmatpush1.msra.mxu1 %v2455_v14 }
 0x16b   :  { %789 = vmatprep.subr.mxu0 %v2464_v16  ;;  %860 = vmatprep.subr.mxu1 %v2466_v17 }
 0x16c   :  { %790 = vmatpush1.msra.mxu0 %v2470_v18  ;;  %861 = vmatpush1.msra.mxu1 %v2472_v19 }
 0x16d   :  { %791 = vmatprep.subr.mxu0 %v3513_v51  ;;  %862 = vmatprep.subr.mxu1 %v3514_v30 }
 0x16e   :  { %792 = vmatpush1.msra.mxu0 %v3515_v60  ;;  %863 = vmatpush1.msra.mxu1 %v3516_v15 }
 0x16f   :  { %793 = vmatprep.subr.mxu0 %v3517_v0  ;;  %864 = vmatprep.subr.mxu1 %v3518_v34  ;;  %v3539_v34 = vld [vmem:[#allocation34_spill] sm:$0xff] }
 0x170   :  { %794 = vmatpush1.msra.mxu0 %v3519_v31  ;;  %865 = vmatpush1.msra.mxu1 %v3520_v42  ;;  %v3538_v31 = vld [vmem:[#allocation36_spill] sm:$0xff] }
 0x171   :  { %795 = vmatprep.subr.mxu0 %v3521_v20  ;;  %866 = vmatprep.subr.mxu1 %v3522_v29 }
 0x172   :  { %796 = vmatpush1.msra.mxu0 %v3523_v24  ;;  %867 = vmatpush1.msra.mxu1 %v3524_v27  ;;  %v3534_v27 = vld [vmem:[#allocation11_spill] sm:$0xff] }
 0x173   :  { %797 = vmatprep.subr.mxu0 %v3525_v26  ;;  %868 = vmatprep.subr.mxu1 %v3526_v21  ;;  %v3535_v26 = vld [vmem:[#allocation12_spill] sm:$0xff] }
 0x174   :  { %798 = vmatpush1.msra.mxu0 %v3527_v25  ;;  %869 = vmatpush1.msra.mxu1 %v3528_v23  ;;  %v3536_v25 = vld [vmem:[#allocation33_spill] sm:$0xff] }
 0x175   :  { %799 = vmatprep.subr.mxu0 %v3529_v28  ;;  %870 = vmatprep.subr.mxu1 %v3530_v32  ;;  %v3537_v28 = vld [vmem:[#allocation35_spill] sm:$0xff] }
 0x176   :  { %800 = vmatpush1.msra.mxu0 %v3531_v35  ;;  %833 = vmatprep.mubr.f32.mxu0 %v3532_v22 }
 0x177   :  { %871 = vmatpush1.msra.mxu1 %v3533_v6  ;;  %904 = vmatprep.mubr.f32.mxu1 %v3532_v22 }
 0x178   :  { %939 = vmatprep.subr.mxu0 %v3534_v27  ;;  %1010 = vmatprep.subr.mxu1 %v3535_v26 }
 0x217   :  { %v665_v21 = vpop.f32.mrf.mxu0  ;;  %v736_v32 = vpop.f32.mrf.mxu1 }
 0x218   :  { %v741_v24 = vadd.f32 %v665_v21, %v3536_v25  ;;  %v743_v22 = vadd.f32 %v736_v32, %v3539_v34 }
 0x219   :  { %v667_v23 = vpop.f32.mrf.mxu0  ;;  %v738_v42 = vpop.f32.mrf.mxu1 }
 0x21a   :  { %v1919_v29 = vmul.f32 -1.442695, %v741_v24  ;;  %v742_v20 = vadd.f32 %v667_v23, %v3537_v28  ;;  %v744_v6 = vadd.f32 %v738_v42, %v3538_v31 }
 0x21c   :  { %2016 = vpow2.f32 %v1919_v29  ;;  %v1920_v35 = vmul.f32 -1.442695, %v742_v20  ;;  %v1921_v0 = vmul.f32 -1.442695, %v744_v6 }
 0x21e   :  { %2018 = vpow2.f32 %v1920_v35 }
 0x21f   :  { %2020 = vtanh.f32 %v743_v22 }
 0x220   :  { %2022 = vpow2.f32 %v1921_v0 }
 0x229   :  { %v2017_v27 = vpop.eup %2016 }
 0x22a   :  { %v748_v15 = vadd.f32 1.0, %v2017_v27 }
 0x22b   :  { %v2019_v26 = vpop.eup %2018 }
 0x22c   :  { %2024 = vrcp.f32 %v748_v15  ;;  %v754_v21 = vadd.f32 1.0, %v2019_v26  ;;  %v2021_v24 = vpop.eup %2020  ;;  %v3561_v15 = vld [vmem:[#allocation39_spill] sm:$0xff]  ;;  %v3562_v26 = vld [vmem:[#allocation40_spill] sm:$0xff] }
 0x22d   :  { %v2023_v25 = vpop.eup %2022 }
 0x22e   :  { %2026 = vrcp.f32 %v754_v21  ;;  %v761_v28 = vadd.f32 1.0, %v2023_v25 }
 0x230   :  { %2028 = vrcp.f32 %v761_v28 }
 0x239   :  { %v2025_v29 = vpop.eup %2024 }
 0x23a   :  { %v765_v23 = vmul.f32 %v2025_v29, %v2021_v24  ;;  %v3563_v24 = vld [vmem:[#allocation38_spill] sm:$0xff] }
 0x23b   :  { %v2027_v20 = vpop.eup %2026 }
 0x23c   :  { %v764_v35 = vmul.f32 %v2027_v20, %v2717_v33 }
 0x23d   :  { %v2029_v34 = vpop.eup %2028 }
 0x23e   :  { %v2791_v31 = vadd.f32 %v765_v23, %v764_v35 }
 0x240   :  { %2030 = vtanh.f32 %v2791_v31 }
 0x24d   :  { %v2031_v42 = vpop.eup %2030 }
 0x24e   :  { %v768_v32 = vmul.f32 %v2031_v42, %v2029_v34 }
 0x250   :  { %834 = vmatmul.mubr.f32.vlgmr.msra.gmra.mxu0 %v768_v32  ;;  %905 = vmatmul.mubr.f32.vlgmr.msra.gmra.mxu1 %v768_v32 }
 0x251   :  { %940 = vmatpush1.msra.mxu0 %v2315_v36  ;;  %1011 = vmatpush1.msra.mxu1 %v2317_v37  ;;  %v3540_v36 = vld [vmem:[#allocation16_spill] sm:$0xff]  ;;  %v3541_v37 = vld [vmem:[#allocation17_spill] sm:$0xff] }
 0x252   :  { %941 = vmatprep.subr.mxu0 %v2321_v38  ;;  %1012 = vmatprep.subr.mxu1 %v2323_v39  ;;  %v3542_v38 = vld [vmem:[#allocation18_spill] sm:$0xff]  ;;  %v3543_v39 = vld [vmem:[#allocation19_spill] sm:$0xff] }
 0x253   :  { %942 = vmatpush1.msra.mxu0 %v2329_v40  ;;  %1013 = vmatpush1.msra.mxu1 %v2331_v41  ;;  %v3544_v40 = vld [vmem:[#allocation20_spill] sm:$0xff]  ;;  %v3545_v41 = vld [vmem:[#allocation21_spill] sm:$0xff] }
 0x254   :  { %943 = vmatprep.subr.mxu0 %v2340_v43  ;;  %1014 = vmatprep.subr.mxu1 %v2342_v44  ;;  %v3546_v43 = vld [vmem:[#allocation22_spill] sm:$0xff]  ;;  %v3547_v44 = vld [vmem:[#allocation23_spill] sm:$0xff] }
 0x255   :  { %944 = vmatpush1.msra.mxu0 %v2346_v45  ;;  %1015 = vmatpush1.msra.mxu1 %v2348_v46  ;;  %v3548_v45 = vld [vmem:[#allocation24_spill] sm:$0xff]  ;;  %v3549_v46 = vld [vmem:[#allocation25_spill] sm:$0xff] }
 0x256   :  { %945 = vmatprep.subr.mxu0 %v2352_v47  ;;  %1016 = vmatprep.subr.mxu1 %v2354_v48  ;;  %v3550_v47 = vld [vmem:[#allocation26_spill] sm:$0xff]  ;;  %v3551_v48 = vld [vmem:[#allocation27_spill] sm:$0xff] }
 0x257   :  { %946 = vmatpush1.msra.mxu0 %v2360_v49  ;;  %1017 = vmatpush1.msra.mxu1 %v2362_v50  ;;  %v3552_v49 = vld [vmem:[#allocation28_spill] sm:$0xff]  ;;  %v3553_v50 = vld [vmem:[#allocation29_spill] sm:$0xff] }
 0x258   :  { %947 = vmatprep.subr.mxu0 %v2371_v52  ;;  %1018 = vmatprep.subr.mxu1 %v2373_v53  ;;  %v3554_v52 = vld [vmem:[#allocation30_spill] sm:$0xff]  ;;  %v3555_v53 = vld [vmem:[#allocation31_spill] sm:$0xff] }
 0x259   :  { %948 = vmatpush1.msra.mxu0 %v2377_v54  ;;  %1019 = vmatpush1.msra.mxu1 %v2379_v55  ;;  %v3556_v54 = vmov 0.0   ;;  %v3557_v55 = vld [vmem:[#allocation32_spill] sm:$0xff] }
 0x25a   :  { %949 = vmatprep.subr.mxu0 %v2383_v56  ;;  %1020 = vmatprep.subr.mxu1 %v2385_v57  ;;  %v2858_v56 = vld [vmem:[#allocation5 + $0x1e8] sm:$0xff]  ;;  %v2861_v57 = vld [vmem:[#allocation5 + $0x1f8] sm:$0xff] }
 0x25b   :  { %950 = vmatpush1.msra.mxu0 %v2391_v58  ;;  %1021 = vmatpush1.msra.mxu1 %v2393_v59  ;;  %3558 = vst [vmem:[#allocation13_spill] sm:$0xff] %v2858_v56  ;;  %3559 = vst [vmem:[#allocation14_spill] sm:$0xff] %v2861_v57  ;;  %v3560_v59 = vld [vmem:[#allocation37_spill] sm:$0xff] }
 0x25c   :  { %951 = vmatprep.subr.mxu0 %v2402_v61  ;;  %1022 = vmatprep.subr.mxu1 %v2404_v62 }
 0x25d   :  { %952 = vmatpush1.msra.mxu0 %v2408_v63  ;;  %1023 = vmatpush1.msra.mxu1 %v2410_v1 }
 0x25e   :  { %953 = vmatprep.subr.mxu0 %v2414_v2  ;;  %1024 = vmatprep.subr.mxu1 %v2416_v3 }
 0x25f   :  { %954 = vmatpush1.msra.mxu0 %v2422_v4  ;;  %1025 = vmatpush1.msra.mxu1 %v2424_v5 }
 0x260   :  { %955 = vmatprep.subr.mxu0 %v2433_v7  ;;  %1026 = vmatprep.subr.mxu1 %v2435_v8 }
 0x261   :  { %956 = vmatpush1.msra.mxu0 %v2439_v9  ;;  %1027 = vmatpush1.msra.mxu1 %v2441_v10 }
 0x262   :  { %957 = vmatprep.subr.mxu0 %v2445_v11  ;;  %1028 = vmatprep.subr.mxu1 %v2447_v12 }
 0x263   :  { %958 = vmatpush1.msra.mxu0 %v2453_v13  ;;  %1029 = vmatpush1.msra.mxu1 %v2455_v14 }
 0x264   :  { %959 = vmatprep.subr.mxu0 %v2464_v16  ;;  %1030 = vmatprep.subr.mxu1 %v2466_v17 }
 0x265   :  { %960 = vmatpush1.msra.mxu0 %v2470_v18  ;;  %1031 = vmatpush1.msra.mxu1 %v2472_v19 }
 0x266   :  { %961 = vmatprep.subr.mxu0 %v3513_v51  ;;  %1032 = vmatprep.subr.mxu1 %v3514_v30 }
 0x267   :  { %962 = vmatpush1.msra.mxu0 %v3515_v60  ;;  %1033 = vmatpush1.msra.mxu1 %v3540_v36 }
 0x268   :  { %963 = vmatprep.subr.mxu0 %v3541_v37  ;;  %1034 = vmatprep.subr.mxu1 %v3542_v38 }
 0x269   :  { %964 = vmatpush1.msra.mxu0 %v3543_v39  ;;  %1035 = vmatpush1.msra.mxu1 %v3544_v40 }
 0x26a   :  { %965 = vmatprep.subr.mxu0 %v3545_v41  ;;  %1036 = vmatprep.subr.mxu1 %v3546_v43 }
 0x26b   :  { %966 = vmatpush1.msra.mxu0 %v3547_v44  ;;  %1037 = vmatpush1.msra.mxu1 %v3548_v45 }
 0x26c   :  { %967 = vmatprep.subr.mxu0 %v3549_v46  ;;  %1038 = vmatprep.subr.mxu1 %v3550_v47 }
 0x26d   :  { %968 = vmatpush1.msra.mxu0 %v3551_v48  ;;  %1039 = vmatpush1.msra.mxu1 %v3552_v49 }
 0x26e   :  { %969 = vmatprep.subr.mxu0 %v3553_v50  ;;  %1040 = vmatprep.subr.mxu1 %v3554_v52 }
 0x26f   :  { %970 = vmatpush1.msra.mxu0 %v3555_v53  ;;  %1003 = vmatprep.mubr.f32.mxu0 %v3556_v54 }
 0x270   :  { %1041 = vmatpush1.msra.mxu1 %v3557_v55  ;;  %1074 = vmatprep.mubr.f32.mxu1 %v3556_v54 }
 0x271   :  { %1109 = vmatprep.subr.mxu0 %v2858_v56  ;;  %1180 = vmatprep.subr.mxu1 %v2861_v57 }
 0x310   :  { %v835_v58 = vpop.f32.mrf.mxu0  ;;  %v906_v22 = vpop.f32.mrf.mxu1 }
 0x311   :  { %v911_v61 = vadd.f32 %v835_v58, %v3560_v59  ;;  %v913_v25 = vadd.f32 %v906_v22, %v3563_v24  ;;  %v2887_v24 = vld [vmem:[#allocation5 + $0x1d0] sm:$0xff] }
 0x312   :  { %v837_v62 = vpop.f32.mrf.mxu0  ;;  %v908_v27 = vpop.f32.mrf.mxu1 }
 0x313   :  { %v1922_v33 = vmul.f32 -1.442695, %v911_v61  ;;  %v912_v0 = vadd.f32 %v837_v62, %v3561_v15  ;;  %v914_v21 = vadd.f32 %v908_v27, %v3562_v26  ;;  %v2875_v27 = vld [vmem:[#allocation5 + $0x1f0] sm:$0xff]  ;;  %v2878_v26 = vld [vmem:[#allocation5 + $0x1c8] sm:$0xff] }
 0x315   :  { %2032 = vpow2.f32 %v1922_v33  ;;  %v1923_v6 = vmul.f32 -1.442695, %v912_v0  ;;  %v1924_v29 = vmul.f32 -1.442695, %v914_v21  ;;  %v2884_v21 = vld [vmem:[#allocation5 + $0x1c0] sm:$0xff] }
 0x317   :  { %2034 = vpow2.f32 %v1923_v6  ;;  %v2872_v6 = vld [vmem:[#allocation5 + $0x1e0] sm:$0xff] }
 0x318   :  { %2036 = vtanh.f32 %v913_v25  ;;  %v2890_v25 = vld [vmem:[#allocation5 + $0x1a8] sm:$0xff] }
 0x319   :  { %2038 = vpow2.f32 %v1924_v29  ;;  %v2893_v29 = vld [vmem:[#allocation5 + $0x1b8] sm:$0xff] }
 0x322   :  { %v2033_v23 = vpop.eup %2032 }
 0x323   :  { %v918_v20 = vadd.f32 1.0, %v2033_v23  ;;  %v2896_v23 = vld [vmem:[#allocation5 + $0x1a0] sm:$0xff] }
 0x324   :  { %v2035_v28 = vpop.eup %2034 }
 0x325   :  { %2040 = vrcp.f32 %v918_v20  ;;  %v924_v35 = vadd.f32 1.0, %v2035_v28  ;;  %v2037_v34 = vpop.eup %2036  ;;  %v2899_v20 = vld [vmem:[#allocation5 + $0x1b0] sm:$0xff]  ;;  %v2902_v28 = vld [vmem:[#allocation5 + $0x188] sm:$0xff] }
 0x326   :  { %v2039_v42 = vpop.eup %2038 }
 0x327   :  { %2042 = vrcp.f32 %v924_v35  ;;  %v931_v61 = vadd.f32 1.0, %v2039_v42  ;;  %v2905_v35 = vld [vmem:[#allocation5 + $0x198] sm:$0xff]  ;;  %v2911_v42 = vld [vmem:[#allocation5 + $0x190] sm:$0xff] }
 0x329   :  { %2044 = vrcp.f32 %v931_v61  ;;  %v2923_v61 = vld [vmem:[#allocation5 + $0x170] sm:$0xff] }
 0x32a   :  { %3565 = vst [vmem:[#allocation11_spill] sm:$0xff] %v2923_v61 }
 0x332   :  { %v2041_v32 = vpop.eup %2040 }
 0x333   :  { %v935_v58 = vmul.f32 %v2041_v32, %v2037_v34  ;;  %v2908_v34 = vld [vmem:[#allocation5 + $0x180] sm:$0xff]  ;;  %v2914_v32 = vld [vmem:[#allocation5 + $0x168] sm:$0xff] }
 0x334   :  { %v2043_v59 = vpop.eup %2042 }
 0x335   :  { %v934_v62 = vmul.f32 %v2043_v59, %v2791_v31  ;;  %v2881_v31 = vld [vmem:[#allocation5 + $0x1d8] sm:$0xff]  ;;  %v2920_v59 = vld [vmem:[#allocation5 + $0x160] sm:$0xff] }
 0x336   :  { %v2045_v15 = vpop.eup %2044  ;;  %3564 = vst [vmem:[#allocation15_spill] sm:$0xff] %v2920_v59 }
 0x337   :  { %v2869_v33 = vadd.f32 %v935_v58, %v934_v62  ;;  %v2917_v58 = vld [vmem:[#allocation5 + $0x178] sm:$0xff]  ;;  %v2926_v62 = vld [vmem:[#allocation5 + $0x148] sm:$0xff] }
 0x339   :  { %2046 = vtanh.f32 %v2869_v33 }
 0x346   :  { %v2047_v0 = vpop.eup %2046 }
 0x347   :  { %v938_v22 = vmul.f32 %v2047_v0, %v2045_v15  ;;  %v2929_v15 = vld [vmem:[#allocation5 + $0x158] sm:$0xff]  ;;  %v2932_v0 = vld [vmem:[#allocation5 + $0x140] sm:$0xff] }
 0x349   :  { %1004 = vmatmul.mubr.f32.vlgmr.msra.gmra.mxu0 %v938_v22  ;;  %1075 = vmatmul.mubr.f32.vlgmr.msra.gmra.mxu1 %v938_v22  ;;  %v2935_v22 = vld [vmem:[#allocation5 + $0x150] sm:$0xff] }
 0x34a   :  { %1110 = vmatpush1.msra.mxu0 %v2872_v6  ;;  %1181 = vmatpush1.msra.mxu1 %v2875_v27 }
 0x34b   :  { %1111 = vmatprep.subr.mxu0 %v2878_v26  ;;  %1182 = vmatprep.subr.mxu1 %v2881_v31 }
 0x34c   :  { %1112 = vmatpush1.msra.mxu0 %v2884_v21  ;;  %1183 = vmatpush1.msra.mxu1 %v2887_v24 }
 0x34d   :  { %1113 = vmatprep.subr.mxu0 %v2890_v25  ;;  %1184 = vmatprep.subr.mxu1 %v2893_v29 }
 0x34e   :  { %1114 = vmatpush1.msra.mxu0 %v2896_v23  ;;  %1185 = vmatpush1.msra.mxu1 %v2899_v20 }
 0x34f   :  { %1115 = vmatprep.subr.mxu0 %v2902_v28  ;;  %1186 = vmatprep.subr.mxu1 %v2905_v35 }
 0x350   :  { %1116 = vmatpush1.msra.mxu0 %v2908_v34  ;;  %1187 = vmatpush1.msra.mxu1 %v2911_v42 }
 0x351   :  { %1117 = vmatprep.subr.mxu0 %v2914_v32  ;;  %1188 = vmatprep.subr.mxu1 %v2917_v58 }
 0x352   :  { %1118 = vmatpush1.msra.mxu0 %v2920_v59  ;;  %1189 = vmatpush1.msra.mxu1 %v2923_v61  ;;  %v2938_v59 = vld [vmem:[#allocation5 + $0x128] sm:$0xff]  ;;  %v2941_v61 = vld [vmem:[#allocation5 + $0x138] sm:$0xff] }
 0x353   :  { %1119 = vmatprep.subr.mxu0 %v2926_v62  ;;  %1190 = vmatprep.subr.mxu1 %v2929_v15 }
 0x354   :  { %1120 = vmatpush1.msra.mxu0 %v2932_v0  ;;  %1191 = vmatpush1.msra.mxu1 %v2935_v22 }
 0x355   :  { %1121 = vmatprep.subr.mxu0 %v2938_v59  ;;  %1192 = vmatprep.subr.mxu1 %v2941_v61 }
 0x356   :  { %1122 = vmatpush1.msra.mxu0 %v2408_v63  ;;  %1193 = vmatpush1.msra.mxu1 %v2410_v1  ;;  %v3566_v1 = vld [vmem:[#allocation41_spill] sm:$0xff] }
 0x357   :  { %1123 = vmatprep.subr.mxu0 %v2414_v2  ;;  %1194 = vmatprep.subr.mxu1 %v2416_v3 }
 0x358   :  { %1124 = vmatpush1.msra.mxu0 %v2422_v4  ;;  %1195 = vmatpush1.msra.mxu1 %v2424_v5  ;;  %v3567_v5 = vld [vmem:[#allocation43_spill] sm:$0xff] }
 0x359   :  { %1125 = vmatprep.subr.mxu0 %v2433_v7  ;;  %1196 = vmatprep.subr.mxu1 %v2435_v8 }
 0x35a   :  { %1126 = vmatpush1.msra.mxu0 %v2439_v9  ;;  %1197 = vmatpush1.msra.mxu1 %v2441_v10 }
 0x35b   :  { %1127 = vmatprep.subr.mxu0 %v2445_v11  ;;  %1198 = vmatprep.subr.mxu1 %v2447_v12  ;;  %v3568_v11 = vld [vmem:[#allocation44_spill] sm:$0xff] }
 0x35c   :  { %1128 = vmatpush1.msra.mxu0 %v2453_v13  ;;  %1199 = vmatpush1.msra.mxu1 %v2455_v14  ;;  %v3569_v13 = vld [vmem:[#allocation42_spill] sm:$0xff] }
 0x35d   :  { %1129 = vmatprep.subr.mxu0 %v2464_v16  ;;  %1200 = vmatprep.subr.mxu1 %v2466_v17 }
 0x35e   :  { %1130 = vmatpush1.msra.mxu0 %v2470_v18  ;;  %1201 = vmatpush1.msra.mxu1 %v2472_v19 }
 0x35f   :  { %1131 = vmatprep.subr.mxu0 %v3513_v51  ;;  %1202 = vmatprep.subr.mxu1 %v3514_v30 }
 0x360   :  { %1132 = vmatpush1.msra.mxu0 %v3515_v60  ;;  %1203 = vmatpush1.msra.mxu1 %v3540_v36 }
 0x361   :  { %1133 = vmatprep.subr.mxu0 %v3541_v37  ;;  %1204 = vmatprep.subr.mxu1 %v3542_v38 }
 0x362   :  { %1134 = vmatpush1.msra.mxu0 %v3543_v39  ;;  %1205 = vmatpush1.msra.mxu1 %v3544_v40 }
 0x363   :  { %1135 = vmatprep.subr.mxu0 %v3545_v41  ;;  %1206 = vmatprep.subr.mxu1 %v3546_v43 }
 0x364   :  { %1136 = vmatpush1.msra.mxu0 %v3547_v44  ;;  %1207 = vmatpush1.msra.mxu1 %v3548_v45 }
 0x365   :  { %1137 = vmatprep.subr.mxu0 %v3549_v46  ;;  %1208 = vmatprep.subr.mxu1 %v3550_v47  ;;  %v3570_v46 = vld [vmem:[#allocation15_spill] sm:$0xff] }
 0x366   :  { %1138 = vmatpush1.msra.mxu0 %v3551_v48  ;;  %1209 = vmatpush1.msra.mxu1 %v3552_v49  ;;  %v3571_v47 = vld [vmem:[#allocation11_spill] sm:$0xff]  ;;  %v3018_v48 = vld [vmem:[#allocation5 + $0x120] sm:$0xff]  ;;  %v3021_v49 = vld [vmem:[#allocation5 + $0x130] sm:$0xff] }
 0x367   :  { %1139 = vmatprep.subr.mxu0 %v3553_v50  ;;  %1210 = vmatprep.subr.mxu1 %v3554_v52  ;;  %v3024_v50 = vld [vmem:[#allocation5 + $0x108] sm:$0xff]  ;;  %v3027_v52 = vld [vmem:[#allocation5 + $0x118] sm:$0xff] }
 0x368   :  { %1140 = vmatpush1.msra.mxu0 %v3555_v53  ;;  %1173 = vmatprep.mubr.f32.mxu0 %v3556_v54  ;;  %v3030_v53 = vld [vmem:[#allocation5 + $0x100] sm:$0xff] }
 0x369   :  { %1211 = vmatpush1.msra.mxu1 %v3557_v55  ;;  %1244 = vmatprep.mubr.f32.mxu1 %v3556_v54  ;;  %v3033_v55 = vld [vmem:[#allocation5 + $0x110] sm:$0xff] }
 0x36a   :  { %1279 = vmatprep.subr.mxu0 %v2858_v56  ;;  %1350 = vmatprep.subr.mxu1 %v2861_v57 }
 0x409   :  { %v1005_v63 = vpop.f32.mrf.mxu0  ;;  %v1076_v8 = vpop.f32.mrf.mxu1 }
 0x40a   :  { %v1081_v2 = vadd.f32 %v1005_v63, %v3566_v1  ;;  %v1083_v14 = vadd.f32 %v1076_v8, %v3569_v13  ;;  %v3039_v63 = vld [vmem:[#allocation5 + $0xf8] sm:$0xff]  ;;  %v3042_v1 = vld [vmem:[#allocation5 + $0xe0] sm:$0xff]  ;;  %v3060_v8 = vld [vmem:[#allocation5 + $0xa8] sm:$0xff] }
 0x40b   :  { %v1007_v3 = vpop.f32.mrf.mxu0  ;;  %v1078_v10 = vpop.f32.mrf.mxu1  ;;  %v3075_v13 = vld [vmem:[#allocation5 + $0x98] sm:$0xff] }
 0x40c   :  { %v1925_v4 = vmul.f32 -1.442695, %v1081_v2  ;;  %v1082_v7 = vadd.f32 %v1007_v3, %v3567_v5  ;;  %v1084_v12 = vadd.f32 %v1078_v10, %v3568_v11  ;;  %v3045_v2 = vld [vmem:[#allocation5 + $0xf0] sm:$0xff]  ;;  %v3048_v3 = vld [vmem:[#allocation5 + $0xc8] sm:$0xff]  ;;  %v3054_v5 = vld [vmem:[#allocation5 + $0xc0] sm:$0xff] }
 0x40d   :  { %v3066_v10 = vld [vmem:[#allocation5 + $0xa0] sm:$0xff]  ;;  %v3069_v11 = vld [vmem:[#allocation5 + $0xb0] sm:$0xff] }
 0x40e   :  { %2048 = vpow2.f32 %v1925_v4  ;;  %v1926_v9 = vmul.f32 -1.442695, %v1082_v7  ;;  %v1927_v16 = vmul.f32 -1.442695, %v1084_v12  ;;  %v3051_v4 = vld [vmem:[#allocation5 + $0xd8] sm:$0xff]  ;;  %v3057_v7 = vld [vmem:[#allocation5 + $0xd0] sm:$0xff] }
 0x40f   :  { %v3072_v12 = vld [vmem:[#allocation5 + $0x88] sm:$0xff] }
 0x410   :  { %2050 = vpow2.f32 %v1926_v9  ;;  %v3063_v9 = vld [vmem:[#allocation5 + $0xb8] sm:$0xff] }
 0x411   :  { %2052 = vtanh.f32 %v1083_v14  ;;  %v3078_v14 = vld [vmem:[#allocation5 + $0x80] sm:$0xff] }
 0x412   :  { %2054 = vpow2.f32 %v1927_v16  ;;  %v3081_v16 = vld [vmem:[#allocation5 + $0x90] sm:$0xff] }
 0x413   :  { %3572 = vst [vmem:[#allocation12_spill] sm:$0xff] %v3081_v16 }
 0x41b   :  { %v2049_v17 = vpop.eup %2048 }
 0x41c   :  { %v1088_v18 = vadd.f32 1.0, %v2049_v17  ;;  %v3084_v17 = vld [vmem:[#allocation5 + $0x68] sm:$0xff] }
 0x41d   :  { %v2051_v19 = vpop.eup %2050  ;;  %3573 = vst [vmem:[#allocation33_spill] sm:$0xff] %v3084_v17 }
 0x41e   :  { %2056 = vrcp.f32 %v1088_v18  ;;  %v1094_v51 = vadd.f32 1.0, %v2051_v19  ;;  %v2053_v30 = vpop.eup %2052  ;;  %v3087_v18 = vld [vmem:[#allocation5 + $0x78] sm:$0xff]  ;;  %v3090_v19 = vld [vmem:[#allocation5 + $0x60] sm:$0xff] }
 0x41f   :  { %v2055_v60 = vpop.eup %2054  ;;  %3574 = vst [vmem:[#allocation35_spill] sm:$0xff] %v3087_v18  ;;  %3575 = vst [vmem:[#allocation36_spill] sm:$0xff] %v3090_v19 }
 0x420   :  { %2058 = vrcp.f32 %v1094_v51  ;;  %v1101_v39 = vadd.f32 1.0, %v2055_v60  ;;  %v3093_v51 = vld [vmem:[#allocation5 + $0x70] sm:$0xff]  ;;  %v3099_v60 = vld [vmem:[#allocation5 + $0x58] sm:$0xff] }
 0x421   :  { %3576 = vst [vmem:[#allocation34_spill] sm:$0xff] %v3093_v51  ;;  %3578 = vst [vmem:[#allocation17_spill] sm:$0xff] %v3099_v60 }
 0x422   :  { %2060 = vrcp.f32 %v1101_v39  ;;  %v3111_v39 = vld [vmem:[#allocation5 + $0x38] sm:$0xff] }
 0x423   :  { %3582 = vst [vmem:[#allocation21_spill] sm:$0xff] %v3111_v39 }
 0x42b   :  { %v2057_v36 = vpop.eup %2056 }
 0x42c   :  { %v1105_v37 = vmul.f32 %v2057_v36, %v2053_v30  ;;  %v3096_v30 = vld [vmem:[#allocation5 + $0x48] sm:$0xff]  ;;  %v3102_v36 = vld [vmem:[#allocation5 + $0x40] sm:$0xff] }
 0x42d   :  { %v2059_v38 = vpop.eup %2058  ;;  %3577 = vst [vmem:[#allocation16_spill] sm:$0xff] %v3096_v30  ;;  %3579 = vst [vmem:[#allocation18_spill] sm:$0xff] %v3102_v36 }
 0x42e   :  { %v1104_v40 = vmul.f32 %v2059_v38, %v2869_v33  ;;  %v3036_v33 = vld [vmem:[#allocation5 + $0xe8] sm:$0xff] }
 0x42f   :  { %v2061_v43 = vpop.eup %2060  ;;  %v3108_v38 = vld [vmem:[#allocation5 + $0x28] sm:$0xff] }
 0x430   :  { %v2991_v41 = vadd.f32 %v1105_v37, %v1104_v40  ;;  %v3105_v37 = vld [vmem:[#allocation5 + $0x50] sm:$0xff]  ;;  %3581 = vst [vmem:[#allocation20_spill] sm:$0xff] %v3108_v38  ;;  %v3114_v40 = vld [vmem:[#allocation5 + $0x20] sm:$0xff] }
 0x431   :  { %3580 = vst [vmem:[#allocation19_spill] sm:$0xff] %v3105_v37  ;;  %3583 = vst [vmem:[#allocation22_spill] sm:$0xff] %v3114_v40 }
 0x432   :  { %2062 = vtanh.f32 %v2991_v41 }
 0x43f   :  { %v2063_v44 = vpop.eup %2062 }
 0x440   :  { %v1108_v45 = vmul.f32 %v2063_v44, %v2061_v43  ;;  %v3117_v43 = vld [vmem:[#allocation5 + $0x30] sm:$0xff]  ;;  %v3120_v44 = vld [vmem:[#allocation5 + $0x8] sm:$0xff] }
 0x441   :  { %3584 = vst [vmem:[#allocation23_spill] sm:$0xff] %v3117_v43  ;;  %3585 = vst [vmem:[#allocation24_spill] sm:$0xff] %v3120_v44 }
 0x442   :  { %1174 = vmatmul.mubr.f32.vlgmr.msra.gmra.mxu0 %v1108_v45  ;;  %1245 = vmatmul.mubr.f32.vlgmr.msra.gmra.mxu1 %v1108_v45  ;;  %v3123_v45 = vld [vmem:[#allocation5 + $0x18] sm:$0xff] }
 0x443   :  { %1280 = vmatpush1.msra.mxu0 %v2872_v6  ;;  %1351 = vmatpush1.msra.mxu1 %v2875_v27  ;;  %3586 = vst [vmem:[#allocation25_spill] sm:$0xff] %v3123_v45 }
 0x444   :  { %1281 = vmatprep.subr.mxu0 %v2878_v26  ;;  %1352 = vmatprep.subr.mxu1 %v2881_v31 }
 0x445   :  { %1282 = vmatpush1.msra.mxu0 %v2884_v21  ;;  %1353 = vmatpush1.msra.mxu1 %v2887_v24 }
 0x446   :  { %1283 = vmatprep.subr.mxu0 %v2890_v25  ;;  %1354 = vmatprep.subr.mxu1 %v2893_v29 }
 0x447   :  { %1284 = vmatpush1.msra.mxu0 %v2896_v23  ;;  %1355 = vmatpush1.msra.mxu1 %v2899_v20 }
 0x448   :  { %1285 = vmatprep.subr.mxu0 %v2902_v28  ;;  %1356 = vmatprep.subr.mxu1 %v2905_v35 }
 0x449   :  { %1286 = vmatpush1.msra.mxu0 %v2908_v34  ;;  %1357 = vmatpush1.msra.mxu1 %v2911_v42 }
 0x44a   :  { %1287 = vmatprep.subr.mxu0 %v2914_v32  ;;  %1358 = vmatprep.subr.mxu1 %v2917_v58 }
 0x44b   :  { %1288 = vmatpush1.msra.mxu0 %v3570_v46  ;;  %1359 = vmatpush1.msra.mxu1 %v3571_v47 }
 0x44c   :  { %1289 = vmatprep.subr.mxu0 %v2926_v62  ;;  %1360 = vmatprep.subr.mxu1 %v2929_v15 }
 0x44d   :  { %1290 = vmatpush1.msra.mxu0 %v2932_v0  ;;  %1361 = vmatpush1.msra.mxu1 %v2935_v22 }
 0x44e   :  { %1291 = vmatprep.subr.mxu0 %v2938_v59  ;;  %1362 = vmatprep.subr.mxu1 %v2941_v61 }
 0x44f   :  { %1292 = vmatpush1.msra.mxu0 %v3018_v48  ;;  %1363 = vmatpush1.msra.mxu1 %v3021_v49 }
 0x450   :  { %1293 = vmatprep.subr.mxu0 %v3024_v50  ;;  %1364 = vmatprep.subr.mxu1 %v3027_v52 }
 0x451   :  { %1294 = vmatpush1.msra.mxu0 %v3030_v53  ;;  %1365 = vmatpush1.msra.mxu1 %v3033_v55 }
 0x452   :  { %1295 = vmatprep.subr.mxu0 %v3036_v33  ;;  %1366 = vmatprep.subr.mxu1 %v3039_v63 }
 0x453   :  { %1296 = vmatpush1.msra.mxu0 %v3042_v1  ;;  %1367 = vmatpush1.msra.mxu1 %v3045_v2 }
 0x454   :  { %1297 = vmatprep.subr.mxu0 %v3048_v3  ;;  %1368 = vmatprep.subr.mxu1 %v3051_v4 }
 0x455   :  { %1298 = vmatpush1.msra.mxu0 %v3054_v5  ;;  %1369 = vmatpush1.msra.mxu1 %v3057_v7 }
 0x456   :  { %1299 = vmatprep.subr.mxu0 %v3060_v8  ;;  %1370 = vmatprep.subr.mxu1 %v3063_v9 }
 0x457   :  { %1300 = vmatpush1.msra.mxu0 %v3066_v10  ;;  %1371 = vmatpush1.msra.mxu1 %v3069_v11 }
 0x458   :  { %1301 = vmatprep.subr.mxu0 %v3072_v12  ;;  %1372 = vmatprep.subr.mxu1 %v3075_v13 }
 0x459   :  { %1302 = vmatpush1.msra.mxu0 %v3078_v14  ;;  %1373 = vmatpush1.msra.mxu1 %v3081_v16 }
 0x45a   :  { %1303 = vmatprep.subr.mxu0 %v3084_v17  ;;  %1374 = vmatprep.subr.mxu1 %v3087_v18  ;;  %v3592_v18 = vld [vmem:[#allocation46_spill] sm:$0xff] }
 0x45b   :  { %1304 = vmatpush1.msra.mxu0 %v3090_v19  ;;  %1375 = vmatpush1.msra.mxu1 %v3093_v51  ;;  %v3591_v19 = vld [vmem:[#allocation48_spill] sm:$0xff] }
 0x45c   :  { %1305 = vmatprep.subr.mxu0 %v3096_v30  ;;  %1376 = vmatprep.subr.mxu1 %v3099_v60 }
 0x45d   :  { %1306 = vmatpush1.msra.mxu0 %v3102_v36  ;;  %1377 = vmatpush1.msra.mxu1 %v3105_v37  ;;  %v3590_v36 = vld [vmem:[#allocation47_spill] sm:$0xff] }
 0x45e   :  { %1307 = vmatprep.subr.mxu0 %v3108_v38  ;;  %1378 = vmatprep.subr.mxu1 %v3111_v39  ;;  %v3126_v38 = vld [vmem:[#allocation5] sm:$0xff]  ;;  %v3130_v39 = vld [vmem:[#allocation5 + $0x10] sm:$0xff] }
 0x45f   :  { %1308 = vmatpush1.msra.mxu0 %v3114_v40  ;;  %1379 = vmatpush1.msra.mxu1 %v3117_v43  ;;  %3587 = vst [vmem:[#allocation26_spill] sm:$0xff] %v3126_v38  ;;  %3588 = vst [vmem:[#allocation27_spill] sm:$0xff] %v3130_v39  ;;  %v3589_v43 = vld [vmem:[#allocation45_spill] sm:$0xff] }
 0x460   :  { %1309 = vmatprep.subr.mxu0 %v3120_v44  ;;  %1380 = vmatprep.subr.mxu1 %v3123_v45 }
 0x461   :  { %1310 = vmatpush1.msra.mxu0 %v3126_v38  ;;  %1343 = vmatprep.mubr.f32.mxu0 %v3556_v54 }
 0x462   :  { %1381 = vmatpush1.msra.mxu1 %v3130_v39  ;;  %1414 = vmatprep.mubr.f32.mxu1 %v3556_v54 }
 0x463   :  { %1449 = vmatprep.subr.mxu0 %v2858_v56  ;;  %1520 = vmatprep.subr.mxu1 %v2861_v57 }
 0x502   :  { %v1175_v44 = vpop.f32.mrf.mxu0  ;;  %v1246_v38 = vpop.f32.mrf.mxu1 }
 0x503   :  { %v1251_v40 = vadd.f32 %v1175_v44, %v3589_v43  ;;  %v1253_v54 = vadd.f32 %v1246_v38, %v3592_v18  ;;  %v3598_v38 = vld [vmem:[#allocation16_spill] sm:$0xff] }
 0x504   :  { %v1177_v45 = vpop.f32.mrf.mxu0  ;;  %v1248_v51 = vpop.f32.mrf.mxu1 }
 0x505   :  { %v1928_v37 = vmul.f32 -1.442695, %v1251_v40  ;;  %v1252_v60 = vadd.f32 %v1177_v45, %v3590_v36  ;;  %v1254_v39 = vadd.f32 %v1248_v51, %v3591_v19  ;;  %v3597_v51 = vld [vmem:[#allocation34_spill] sm:$0xff] }
 0x507   :  { %2064 = vpow2.f32 %v1928_v37  ;;  %v1929_v30 = vmul.f32 -1.442695, %v1252_v60  ;;  %v1930_v17 = vmul.f32 -1.442695, %v1254_v39  ;;  %v3599_v39 = vld [vmem:[#allocation17_spill] sm:$0xff] }
 0x509   :  { %2066 = vpow2.f32 %v1929_v30 }
 0x50a   :  { %2068 = vtanh.f32 %v1253_v54 }
 0x50b   :  { %2070 = vpow2.f32 %v1930_v17  ;;  %v3596_v17 = vld [vmem:[#allocation36_spill] sm:$0xff] }
 0x514   :  { %v2065_v56 = vpop.eup %2064 }
 0x515   :  { %v1258_v16 = vadd.f32 1.0, %v2065_v56 }
 0x516   :  { %v2067_v57 = vpop.eup %2066 }
 0x517   :  { %2072 = vrcp.f32 %v1258_v16  ;;  %v1264_v43 = vadd.f32 1.0, %v2067_v57  ;;  %v2069_v40 = vpop.eup %2068  ;;  %v3593_v57 = vld [vmem:[#allocation12_spill] sm:$0xff]  ;;  %v3595_v16 = vld [vmem:[#allocation35_spill] sm:$0xff] }
 0x518   :  { %v2071_v36 = vpop.eup %2070 }
 0x519   :  { %2074 = vrcp.f32 %v1264_v43  ;;  %v1271_v30 = vadd.f32 1.0, %v2071_v36  ;;  %v3600_v43 = vld [vmem:[#allocation18_spill] sm:$0xff]  ;;  %v3602_v36 = vld [vmem:[#allocation20_spill] sm:$0xff] }
 0x51b   :  { %2076 = vrcp.f32 %v1271_v30  ;;  %v3606_v30 = vld [vmem:[#allocation24_spill] sm:$0xff] }
 0x524   :  { %v2073_v37 = vpop.eup %2072 }
 0x525   :  { %v1275_v44 = vmul.f32 %v2073_v37, %v2069_v40  ;;  %v3601_v40 = vld [vmem:[#allocation19_spill] sm:$0xff]  ;;  %v3603_v37 = vld [vmem:[#allocation21_spill] sm:$0xff] }
 0x526   :  { %v2075_v60 = vpop.eup %2074 }
 0x527   :  { %v1274_v45 = vmul.f32 %v2075_v60, %v2991_v41  ;;  %v3594_v41 = vld [vmem:[#allocation33_spill] sm:$0xff]  ;;  %v3605_v60 = vld [vmem:[#allocation23_spill] sm:$0xff] }
 0x528   :  { %v2077_v56 = vpop.eup %2076 }
 0x529   :  { %v3141_v19 = vadd.f32 %v1275_v44, %v1274_v45  ;;  %v3604_v44 = vld [vmem:[#allocation22_spill] sm:$0xff]  ;;  %v3607_v45 = vld [vmem:[#allocation25_spill] sm:$0xff] }
 0x52b   :  { %2078 = vtanh.f32 %v3141_v19 }
 0x538   :  { %v2079_v54 = vpop.eup %2078 }
 0x539   :  { %v1278_v18 = vmul.f32 %v2079_v54, %v2077_v56  ;;  %v3608_v56 = vld [vmem:[#allocation26_spill] sm:$0xff]  ;;  %v3609_v54 = vmov 0.0  }
 0x53b   :  { %1344 = vmatmul.mubr.f32.vlgmr.msra.gmra.mxu0 %v1278_v18  ;;  %1415 = vmatmul.mubr.f32.vlgmr.msra.gmra.mxu1 %v1278_v18  ;;  %v3610_v18 = vld [vmem:[#allocation27_spill] sm:$0xff] }
 0x53c   :  { %1450 = vmatpush1.msra.mxu0 %v2872_v6  ;;  %1521 = vmatpush1.msra.mxu1 %v2875_v27 }
 0x53d   :  { %1451 = vmatprep.subr.mxu0 %v2878_v26  ;;  %1522 = vmatprep.subr.mxu1 %v2881_v31 }
 0x53e   :  { %1452 = vmatpush1.msra.mxu0 %v2884_v21  ;;  %1523 = vmatpush1.msra.mxu1 %v2887_v24 }
 0x53f   :  { %1453 = vmatprep.subr.mxu0 %v2890_v25  ;;  %1524 = vmatprep.subr.mxu1 %v2893_v29 }
 0x540   :  { %1454 = vmatpush1.msra.mxu0 %v2896_v23  ;;  %1525 = vmatpush1.msra.mxu1 %v2899_v20 }
 0x541   :  { %1455 = vmatprep.subr.mxu0 %v2902_v28  ;;  %1526 = vmatprep.subr.mxu1 %v2905_v35 }
 0x542   :  { %1456 = vmatpush1.msra.mxu0 %v2908_v34  ;;  %1527 = vmatpush1.msra.mxu1 %v2911_v42 }
 0x543   :  { %1457 = vmatprep.subr.mxu0 %v2914_v32  ;;  %1528 = vmatprep.subr.mxu1 %v2917_v58 }
 0x544   :  { %1458 = vmatpush1.msra.mxu0 %v3570_v46  ;;  %1529 = vmatpush1.msra.mxu1 %v3571_v47 }
 0x545   :  { %1459 = vmatprep.subr.mxu0 %v2926_v62  ;;  %1530 = vmatprep.subr.mxu1 %v2929_v15 }
 0x546   :  { %1460 = vmatpush1.msra.mxu0 %v2932_v0  ;;  %1531 = vmatpush1.msra.mxu1 %v2935_v22 }
 0x547   :  { %1461 = vmatprep.subr.mxu0 %v2938_v59  ;;  %1532 = vmatprep.subr.mxu1 %v2941_v61 }
 0x548   :  { %1462 = vmatpush1.msra.mxu0 %v3018_v48  ;;  %1533 = vmatpush1.msra.mxu1 %v3021_v49 }
 0x549   :  { %1463 = vmatprep.subr.mxu0 %v3024_v50  ;;  %1534 = vmatprep.subr.mxu1 %v3027_v52 }
 0x54a   :  { %1464 = vmatpush1.msra.mxu0 %v3030_v53  ;;  %1535 = vmatpush1.msra.mxu1 %v3033_v55 }
 0x54b   :  { %1465 = vmatprep.subr.mxu0 %v3036_v33  ;;  %1536 = vmatprep.subr.mxu1 %v3039_v63 }
 0x54c   :  { %1466 = vmatpush1.msra.mxu0 %v3042_v1  ;;  %1537 = vmatpush1.msra.mxu1 %v3045_v2 }
 0x54d   :  { %1467 = vmatprep.subr.mxu0 %v3048_v3  ;;  %1538 = vmatprep.subr.mxu1 %v3051_v4 }
 0x54e   :  { %1468 = vmatpush1.msra.mxu0 %v3054_v5  ;;  %1539 = vmatpush1.msra.mxu1 %v3057_v7 }
 0x54f   :  { %1469 = vmatprep.subr.mxu0 %v3060_v8  ;;  %1540 = vmatprep.subr.mxu1 %v3063_v9 }
 0x550   :  { %1470 = vmatpush1.msra.mxu0 %v3066_v10  ;;  %1541 = vmatpush1.msra.mxu1 %v3069_v11 }
 0x551   :  { %1471 = vmatprep.subr.mxu0 %v3072_v12  ;;  %1542 = vmatprep.subr.mxu1 %v3075_v13 }
 0x552   :  { %1472 = vmatpush1.msra.mxu0 %v3078_v14  ;;  %1543 = vmatpush1.msra.mxu1 %v3593_v57 }
 0x553   :  { %1473 = vmatprep.subr.mxu0 %v3594_v41  ;;  %1544 = vmatprep.subr.mxu1 %v3595_v16  ;;  %v3616_v16 = vld [vmem:[#allocation50_spill] sm:$0xff] }
 0x554   :  { %1474 = vmatpush1.msra.mxu0 %v3596_v17  ;;  %1545 = vmatpush1.msra.mxu1 %v3597_v51  ;;  %v3615_v17 = vld [vmem:[#allocation52_spill] sm:$0xff] }
 0x555   :  { %1475 = vmatprep.subr.mxu0 %v3598_v38  ;;  %1546 = vmatprep.subr.mxu1 %v3599_v39 }
 0x556   :  { %1476 = vmatpush1.msra.mxu0 %v3600_v43  ;;  %1547 = vmatpush1.msra.mxu1 %v3601_v40  ;;  %v3611_v40 = vld [vmem:[#allocation13_spill] sm:$0xff] }
 0x557   :  { %1477 = vmatprep.subr.mxu0 %v3602_v36  ;;  %1548 = vmatprep.subr.mxu1 %v3603_v37  ;;  %v3612_v36 = vld [vmem:[#allocation14_spill] sm:$0xff] }
 0x558   :  { %1478 = vmatpush1.msra.mxu0 %v3604_v44  ;;  %1549 = vmatpush1.msra.mxu1 %v3605_v60  ;;  %v3613_v44 = vld [vmem:[#allocation49_spill] sm:$0xff] }
 0x559   :  { %1479 = vmatprep.subr.mxu0 %v3606_v30  ;;  %1550 = vmatprep.subr.mxu1 %v3607_v45  ;;  %v3614_v30 = vld [vmem:[#allocation51_spill] sm:$0xff] }
 0x55a   :  { %1480 = vmatpush1.msra.mxu0 %v3608_v56  ;;  %1513 = vmatprep.mubr.f32.mxu0 %v3609_v54 }
 0x55b   :  { %1551 = vmatpush1.msra.mxu1 %v3610_v18  ;;  %1584 = vmatprep.mubr.f32.mxu1 %v3609_v54 }
 0x55c   :  { %1619 = vmatprep.subr.mxu0 %v3611_v40  ;;  %1690 = vmatprep.subr.mxu1 %v3612_v36 }
 0x5fb   :  { %v1345_v37 = vpop.f32.mrf.mxu0  ;;  %v1416_v45 = vpop.f32.mrf.mxu1 }
 0x5fc   :  { %v1421_v43 = vadd.f32 %v1345_v37, %v3613_v44  ;;  %v1423_v54 = vadd.f32 %v1416_v45, %v3616_v16 }
 0x5fd   :  { %v1347_v60 = vpop.f32.mrf.mxu0  ;;  %v1418_v51 = vpop.f32.mrf.mxu1 }
 0x5fe   :  { %v1931_v39 = vmul.f32 -1.442695, %v1421_v43  ;;  %v1422_v38 = vadd.f32 %v1347_v60, %v3614_v30  ;;  %v1424_v18 = vadd.f32 %v1418_v51, %v3615_v17 }
 0x600   :  { %2080 = vpow2.f32 %v1931_v39  ;;  %v1932_v56 = vmul.f32 -1.442695, %v1422_v38  ;;  %v1933_v41 = vmul.f32 -1.442695, %v1424_v18  ;;  %v1803_v18 = vld [vmem:[%s3370_s4 + $0x70] sm:$0xff] }
 0x602   :  { %2082 = vpow2.f32 %v1932_v56 }
 0x603   :  { %2084 = vtanh.f32 %v1423_v54  ;;  %v1804_v54 = vld [vmem:[%s3370_s4 + $0x78] sm:$0xff] }
 0x604   :  { %2086 = vpow2.f32 %v1933_v41 }
 0x60d   :  { %v2081_v40 = vpop.eup %2080 }
 0x60e   :  { %v1428_v57 = vadd.f32 1.0, %v2081_v40  ;;  %v1802_v40 = vld [vmem:[%s3370_s4 + $0x68] sm:$0xff] }
 0x60f   :  { %v2083_v36 = vpop.eup %2082 }
 0x610   :  { %2088 = vrcp.f32 %v1428_v57  ;;  %v1434_v37 = vadd.f32 1.0, %v2083_v36  ;;  %v2085_v43 = vpop.eup %2084  ;;  %v1801_v36 = vld [vmem:[%s3370_s4 + $0x60] sm:$0xff] }
 0x611   :  { %v2087_v44 = vpop.eup %2086 }
 0x612   :  { %2090 = vrcp.f32 %v1434_v37  ;;  %v1441_v30 = vadd.f32 1.0, %v2087_v44  ;;  %v1800_v37 = vld [vmem:[%s3370_s4 + $0x58] sm:$0xff]  ;;  %v1798_v44 = vld [vmem:[%s3370_s4 + $0x48] sm:$0xff] }
 0x614   :  { %2092 = vrcp.f32 %v1441_v30  ;;  %v1794_v30 = vld [vmem:[%s3370_s4 + $0x28] sm:$0xff] }
 0x61d   :  { %v2089_v39 = vpop.eup %2088 }
 0x61e   :  { %v1445_v60 = vmul.f32 %v2089_v39, %v2085_v43  ;;  %v1799_v43 = vld [vmem:[%s3370_s4 + $0x50] sm:$0xff]  ;;  %v1797_v39 = vld [vmem:[%s3370_s4 + $0x40] sm:$0xff] }
 0x61f   :  { %v2091_v38 = vpop.eup %2090 }
 0x620   :  { %v1444_v56 = vmul.f32 %v2091_v38, %v3141_v19  ;;  %v1795_v38 = vld [vmem:[%s3370_s4 + $0x30] sm:$0xff] }
 0x621   :  { %v2093_v16 = vpop.eup %2092 }
 0x622   :  { %v3215_v17 = vadd.f32 %v1445_v60, %v1444_v56  ;;  %v1796_v60 = vld [vmem:[%s3370_s4 + $0x38] sm:$0xff]  ;;  %v1793_v56 = vld [vmem:[%s3370_s4 + $0x20] sm:$0xff] }
 0x624   :  { %2094 = vtanh.f32 %v3215_v17 }
 0x631   :  { %v2095_v51 = vpop.eup %2094 }
 0x632   :  { %v1448_v45 = vmul.f32 %v2095_v51, %v2093_v16  ;;  %v1791_v16 = vld [vmem:[%s3370_s4 + $0x10] sm:$0xff]  ;;  %v1790_v51 = vld [vmem:[%s3370_s4 + $0x8] sm:$0xff] }
 0x634   :  { %1514 = vmatmul.mubr.f32.vlgmr.msra.gmra.mxu0 %v1448_v45  ;;  %1585 = vmatmul.mubr.f32.vlgmr.msra.gmra.mxu1 %v1448_v45  ;;  %v1789_v45 = vld [vmem:[%s3370_s4] sm:$0xff] }
 0x635   :  { %1620 = vmatpush1.msra.mxu0 %v2872_v6  ;;  %1691 = vmatpush1.msra.mxu1 %v2875_v27  ;;  %v3617_v6 = vld [vmem:[#allocation12_spill] sm:$0xff]  ;;  %v3618_v27 = vld [vmem:[#allocation33_spill] sm:$0xff] }
 0x636   :  { %1621 = vmatprep.subr.mxu0 %v2878_v26  ;;  %1692 = vmatprep.subr.mxu1 %v2881_v31  ;;  %v3619_v26 = vld [vmem:[#allocation35_spill] sm:$0xff]  ;;  %v3620_v31 = vld [vmem:[#allocation36_spill] sm:$0xff] }
 0x637   :  { %1622 = vmatpush1.msra.mxu0 %v2884_v21  ;;  %1693 = vmatpush1.msra.mxu1 %v2887_v24  ;;  %v3621_v21 = vld [vmem:[#allocation34_spill] sm:$0xff]  ;;  %v3622_v24 = vld [vmem:[#allocation16_spill] sm:$0xff] }
 0x638   :  { %1623 = vmatprep.subr.mxu0 %v2890_v25  ;;  %1694 = vmatprep.subr.mxu1 %v2893_v29  ;;  %v3623_v25 = vld [vmem:[#allocation17_spill] sm:$0xff]  ;;  %v3624_v29 = vld [vmem:[#allocation18_spill] sm:$0xff] }
 0x639   :  { %1624 = vmatpush1.msra.mxu0 %v2896_v23  ;;  %1695 = vmatpush1.msra.mxu1 %v2899_v20  ;;  %v3625_v23 = vld [vmem:[#allocation19_spill] sm:$0xff]  ;;  %v3626_v20 = vld [vmem:[#allocation20_spill] sm:$0xff] }
 0x63a   :  { %1625 = vmatprep.subr.mxu0 %v2902_v28  ;;  %1696 = vmatprep.subr.mxu1 %v2905_v35  ;;  %v3627_v28 = vld [vmem:[#allocation21_spill] sm:$0xff]  ;;  %v3628_v35 = vld [vmem:[#allocation22_spill] sm:$0xff] }
 0x63b   :  { %1626 = vmatpush1.msra.mxu0 %v2908_v34  ;;  %1697 = vmatpush1.msra.mxu1 %v2911_v42  ;;  %v3629_v34 = vld [vmem:[#allocation23_spill] sm:$0xff]  ;;  %v3630_v42 = vld [vmem:[#allocation24_spill] sm:$0xff] }
 0x63c   :  { %1627 = vmatprep.subr.mxu0 %v2914_v32  ;;  %1698 = vmatprep.subr.mxu1 %v2917_v58  ;;  %v3631_v32 = vld [vmem:[#allocation25_spill] sm:$0xff]  ;;  %v3632_v58 = vld [vmem:[#allocation26_spill] sm:$0xff] }
 0x63d   :  { %1628 = vmatpush1.msra.mxu0 %v3570_v46  ;;  %1699 = vmatpush1.msra.mxu1 %v3571_v47  ;;  %v3636_v47 = vld [vmem:[#allocation55_spill] sm:$0xff] }
 0x63e   :  { %1629 = vmatprep.subr.mxu0 %v2926_v62  ;;  %1700 = vmatprep.subr.mxu1 %v2929_v15  ;;  %v3635_v15 = vld [vmem:[#allocation53_spill] sm:$0xff] }
 0x63f   :  { %1630 = vmatpush1.msra.mxu0 %v2932_v0  ;;  %1701 = vmatpush1.msra.mxu1 %v2935_v22 }
 0x640   :  { %1631 = vmatprep.subr.mxu0 %v2938_v59  ;;  %1702 = vmatprep.subr.mxu1 %v2941_v61  ;;  %v3633_v59 = vmov 0.0   ;;  %v3634_v61 = vld [vmem:[#allocation27_spill] sm:$0xff] }
 0x641   :  { %1632 = vmatpush1.msra.mxu0 %v3018_v48  ;;  %1703 = vmatpush1.msra.mxu1 %v3021_v49 }
 0x642   :  { %1633 = vmatprep.subr.mxu0 %v3024_v50  ;;  %1704 = vmatprep.subr.mxu1 %v3027_v52 }
 0x643   :  { %1634 = vmatpush1.msra.mxu0 %v3030_v53  ;;  %1705 = vmatpush1.msra.mxu1 %v3033_v55  ;;  %v3637_v53 = vld [vmem:[#allocation56_spill] sm:$0xff] }
 0x644   :  { %1635 = vmatprep.subr.mxu0 %v3036_v33  ;;  %1706 = vmatprep.subr.mxu1 %v3039_v63  ;;  %v3638_v33 = vld [vmem:[#allocation54_spill] sm:$0xff] }
 0x645   :  { %1636 = vmatpush1.msra.mxu0 %v3042_v1  ;;  %1707 = vmatpush1.msra.mxu1 %v3045_v2 }
 0x646   :  { %1637 = vmatprep.subr.mxu0 %v3048_v3  ;;  %1708 = vmatprep.subr.mxu1 %v3051_v4 }
 0x647   :  { %1638 = vmatpush1.msra.mxu0 %v3054_v5  ;;  %1709 = vmatpush1.msra.mxu1 %v3057_v7 }
 0x648   :  { %1639 = vmatprep.subr.mxu0 %v3060_v8  ;;  %1710 = vmatprep.subr.mxu1 %v3063_v9 }
 0x649   :  { %1640 = vmatpush1.msra.mxu0 %v3066_v10  ;;  %1711 = vmatpush1.msra.mxu1 %v3069_v11 }
 0x64a   :  { %1641 = vmatprep.subr.mxu0 %v3072_v12  ;;  %1712 = vmatprep.subr.mxu1 %v3075_v13 }
 0x64b   :  { %1642 = vmatpush1.msra.mxu0 %v3078_v14  ;;  %1713 = vmatpush1.msra.mxu1 %v3617_v6 }
 0x64c   :  { %1643 = vmatprep.subr.mxu0 %v3618_v27  ;;  %1714 = vmatprep.subr.mxu1 %v3619_v26  ;;  %v3639_v27 = vld [vmem:[#allocation57_spill] sm:$0xff] }
 0x64d   :  { %1644 = vmatpush1.msra.mxu0 %v3620_v31  ;;  %1715 = vmatpush1.msra.mxu1 %v3621_v21 }
 0x64e   :  { %1645 = vmatprep.subr.mxu0 %v3622_v24  ;;  %1716 = vmatprep.subr.mxu1 %v3623_v25  ;;  %v3640_v24 = vld [vmem:[#allocation59_spill] sm:$0xff] }
 0x64f   :  { %1646 = vmatpush1.msra.mxu0 %v3624_v29  ;;  %1717 = vmatpush1.msra.mxu1 %v3625_v23 }
 0x650   :  { %1647 = vmatprep.subr.mxu0 %v3626_v20  ;;  %1718 = vmatprep.subr.mxu1 %v3627_v28  ;;  %v3641_v28 = vld [vmem:[#allocation60_spill] sm:$0xff] }
 0x651   :  { %1648 = vmatpush1.msra.mxu0 %v3628_v35  ;;  %1719 = vmatpush1.msra.mxu1 %v3629_v34  ;;  %v3642_v34 = vld [vmem:[#allocation58_spill] sm:$0xff] }
 0x652   :  { %1649 = vmatprep.subr.mxu0 %v3630_v42  ;;  %1720 = vmatprep.subr.mxu1 %v3631_v32 }
 0x653   :  { %1650 = vmatpush1.msra.mxu0 %v3632_v58  ;;  %1683 = vmatprep.mubr.f32.mxu0 %v3633_v59 }
 0x654   :  { %1721 = vmatpush1.msra.mxu1 %v3634_v61  ;;  %1754 = vmatprep.mubr.f32.mxu1 %v3633_v59 }
 0x655   :  { %1958 = vmatprep.subr.mxu0 %v3633_v59 }
 0x6f4   :  { %v1515_v62 = vpop.f32.mrf.mxu0  ;;  %v1586_v49 = vpop.f32.mrf.mxu1 }
 0x6f5   :  { %v1591_v0 = vadd.f32 %v1515_v62, %v3635_v15  ;;  %v1593_v63 = vadd.f32 %v1586_v49, %v3638_v33  ;;  %v1940_v33 = vld [vmem:[%s3371_s5] ss:$0 sm:$0xff] }
 0x6f6   :  { %v1517_v22 = vpop.f32.mrf.mxu0  ;;  %v1588_v52 = vpop.f32.mrf.mxu1 }
 0x6f7   :  { %v1934_v46 = vmul.f32 -1.442695, %v1591_v0  ;;  %v1592_v48 = vadd.f32 %v1517_v22, %v3636_v47  ;;  %v1594_v55 = vadd.f32 %v1588_v52, %v3637_v53 }
 0x6f9   :  { %2096 = vpow2.f32 %v1934_v46  ;;  %v1935_v50 = vmul.f32 -1.442695, %v1592_v48  ;;  %v1936_v1 = vmul.f32 -1.442695, %v1594_v55 }
 0x6fb   :  { %2098 = vpow2.f32 %v1935_v50 }
 0x6fc   :  { %2100 = vtanh.f32 %v1593_v63 }
 0x6fd   :  { %2102 = vpow2.f32 %v1936_v1 }
 0x706   :  { %v2097_v2 = vpop.eup %2096 }
 0x707   :  { %v1598_v3 = vadd.f32 1.0, %v2097_v2 }
 0x708   :  { %v2099_v4 = vpop.eup %2098 }
 0x709   :  { %2104 = vrcp.f32 %v1598_v3  ;;  %v1604_v5 = vadd.f32 1.0, %v2099_v4  ;;  %v2101_v7 = vpop.eup %2100 }
 0x70a   :  { %v2103_v8 = vpop.eup %2102 }
 0x70b   :  { %2106 = vrcp.f32 %v1604_v5  ;;  %v1611_v12 = vadd.f32 1.0, %v2103_v8 }
 0x70d   :  { %2108 = vrcp.f32 %v1611_v12 }
 0x716   :  { %v2105_v9 = vpop.eup %2104 }
 0x717   :  { %v1615_v10 = vmul.f32 %v2105_v9, %v2101_v7 }
 0x718   :  { %v2107_v11 = vpop.eup %2106 }
 0x719   :  { %v1614_v13 = vmul.f32 %v2107_v11, %v3215_v17  ;;  %v1792_v17 = vld [vmem:[%s3370_s4 + $0x18] sm:$0xff] }
 0x71a   :  { %v2109_v19 = vpop.eup %2108 }
 0x71b   :  { %v3288_v14 = vadd.f32 %v1615_v10, %v1614_v13 }
 0x71d   :  { %2110 = vtanh.f32 %v3288_v14 }
 0x72a   :  { %v2111_v57 = vpop.eup %2110 }
 0x72b   :  { %v1618_v41 = vmul.f32 %v2111_v57, %v2109_v19 }
 0x72d   :  { %1684 = vmatmul.mubr.f32.vlgmr.msra.gmra.mxu0 %v1618_v41  ;;  %1755 = vmatmul.mubr.f32.vlgmr.msra.gmra.mxu1 %v1618_v41 }
 0x72e   :  { %1959 = vmatpush3.msra.mxu0 %v1804_v54  ;;  %1990 = vmatprep.mubr.msk.f32.mxu0 %vm2263_vm1, %v3633_v59 }
 0x72f   :  { %1960 = vmatprep.subr.mxu0 %v3633_v59 }
 0x730   :  { %1961 = vmatpush3.msra.mxu0 %v1803_v18 }
 0x731   :  { %1962 = vmatprep.subr.mxu0 %v3633_v59 }
 0x732   :  { %1963 = vmatpush3.msra.mxu0 %v1802_v40 }
 0x733   :  { %1964 = vmatprep.subr.mxu0 %v3633_v59 }
 0x734   :  { %1965 = vmatpush3.msra.mxu0 %v1801_v36 }
 0x735   :  { %1966 = vmatprep.subr.mxu0 %v3633_v59 }
 0x736   :  { %1967 = vmatpush3.msra.mxu0 %v1800_v37 }
 0x737   :  { %1968 = vmatprep.subr.mxu0 %v3633_v59 }
 0x738   :  { %1969 = vmatpush3.msra.mxu0 %v1799_v43 }
 0x739   :  { %1970 = vmatprep.subr.mxu0 %v3633_v59 }
 0x73a   :  { %1971 = vmatpush3.msra.mxu0 %v1798_v44 }
 0x73b   :  { %1972 = vmatprep.subr.mxu0 %v3633_v59 }
 0x73c   :  { %1973 = vmatpush3.msra.mxu0 %v1797_v39 }
 0x73d   :  { %1974 = vmatprep.subr.mxu0 %v3633_v59 }
 0x73e   :  { %1975 = vmatpush3.msra.mxu0 %v1796_v60 }
 0x73f   :  { %1976 = vmatprep.subr.mxu0 %v3633_v59 }
 0x740   :  { %1977 = vmatpush3.msra.mxu0 %v1795_v38 }
 0x741   :  { %1978 = vmatprep.subr.mxu0 %v3633_v59 }
 0x742   :  { %1979 = vmatpush3.msra.mxu0 %v1794_v30 }
 0x743   :  { %1980 = vmatprep.subr.mxu0 %v3633_v59 }
 0x744   :  { %1981 = vmatpush3.msra.mxu0 %v1793_v56 }
 0x745   :  { %1982 = vmatprep.subr.mxu0 %v3633_v59 }
 0x746   :  { %1983 = vmatpush3.msra.mxu0 %v1792_v17 }
 0x747   :  { %1984 = vmatprep.subr.mxu0 %v3633_v59 }
 0x748   :  { %1985 = vmatpush3.msra.mxu0 %v1791_v16 }
 0x749   :  { %1986 = vmatprep.subr.mxu0 %v3633_v59 }
 0x74a   :  { %1987 = vmatpush3.msra.mxu0 %v1790_v51 }
 0x74b   :  { %1988 = vmatprep.subr.mxu0 %v3633_v59 }
 0x74c   :  { %1989 = vmatpush3.msra.mxu0 %v1789_v45 }
 0x7ed   :  { %v1685_v6 = vpop.f32.mrf.mxu0  ;;  %v1756_v29 = vpop.f32.mrf.mxu1 }
 0x7ee   :  { %v1761_v26 = vadd.f32 %v1685_v6, %v3639_v27  ;;  %v1763_v42 = vadd.f32 %v1756_v29, %v3642_v34 }
 0x7ef   :  { %v1687_v31 = vpop.f32.mrf.mxu0  ;;  %v1758_v20 = vpop.f32.mrf.mxu1 }
 0x7f0   :  { %v1937_v21 = vmul.f32 -1.442695, %v1761_v26  ;;  %v1762_v25 = vadd.f32 %v1687_v31, %v3640_v24  ;;  %v1764_v35 = vadd.f32 %v1758_v20, %v3641_v28 }
 0x7f2   :  { %2112 = vpow2.f32 %v1937_v21  ;;  %v1938_v23 = vmul.f32 -1.442695, %v1762_v25  ;;  %v1939_v32 = vmul.f32 -1.442695, %v1764_v35 }
 0x7f4   :  { %2114 = vpow2.f32 %v1938_v23 }
 0x7f5   :  { %2116 = vtanh.f32 %v1763_v42 }
 0x7f6   :  { %2118 = vpow2.f32 %v1939_v32 }
 0x7ff   :  { %v2113_v58 = vpop.eup %2112 }
 0x800   :  { %v1768_v59 = vadd.f32 1.0, %v2113_v58 }
 0x801   :  { %v2115_v61 = vpop.eup %2114 }
 0x802   :  { %2120 = vrcp.f32 %v1768_v59  ;;  %v1774_v62 = vadd.f32 1.0, %v2115_v61  ;;  %v2117_v15 = vpop.eup %2116 }
 0x803   :  { %v2119_v0 = vpop.eup %2118 }
 0x804   :  { %2122 = vrcp.f32 %v1774_v62  ;;  %v1781_v48 = vadd.f32 1.0, %v2119_v0 }
 0x806   :  { %2124 = vrcp.f32 %v1781_v48 }
 0x80f   :  { %v2121_v22 = vpop.eup %2120 }
 0x810   :  { %v1785_v46 = vmul.f32 %v2121_v22, %v2117_v15 }
 0x811   :  { %v2123_v47 = vpop.eup %2122 }
 0x812   :  { %v1784_v49 = vmul.f32 %v2123_v47, %v3288_v14 }
 0x813   :  { %v2125_v52 = vpop.eup %2124 }
 0x814   :  { %v1786_v50 = vadd.f32 %v1785_v46, %v1784_v49 }
 0x816   :  { %2126 = vtanh.f32 %v1786_v50 }
 0x823   :  { %v2127_v53 = vpop.eup %2126 }
 0x824   :  { %v1788_v55 = vmul.f32 %v2127_v53, %v2125_v52 }
 0x826   :  { %1991 = vmatmul.mubr.f32.vlgmr.msra.gmra.mxu0 %v1788_v55 }
 0x8e6   :  { %v1878_v63 = vpop.f32.mrf.mxu0 }
 0x8e7   :  { %v1879_v1 = vadd.f32 %v1940_v33, %v1878_v63 }
 0x8e8   :  { %v1992_v2 = vpop.f32.mrf.mxu0 }
 0x8e9   :  { %1883 = vst.msk [vmem:[#allocation7] sm:$0xff] %vm1882_vm2, %v1879_v1 }
 0x8ea   :  { %2243 = shalt.err (!%p2240_p0)
}
 0x8eb   :  { %1893 = dma.vmem_to_hbm [thread:$0]  %s1891_s29, 128, %s3372_s6, [#allocation4]  }
 0x8ec   :  { %2256 = dma.done.wait [#allocation4], 128  }
 0x8ed   :  { %2257 = vsyncadd [#allocation4], 4294967168 }
 0x8ee   :  { %1897 = vsyncpa [#allocation3], 1 }
 0x8ef   :  { %1898 = vsyncpa [#allocation6], 1 }
 0x8f0   :  { %1899 = vsyncpa [#allocation4], 1 }

</bundles_post_ra>
